<compile_context>
chip_gen: v5e
topology: v5e:2x2
jax: 0.10.0
libtpu: 0.0.40
codegen_flags: <defaults>
</compile_context>

<pallas_src>
import functools

import jax
import jax.numpy as jnp
import numpy as np
from jax.experimental import pallas as pl
from jax.experimental.pallas import tpu as pltpu


def _attention_kernel(x_ref, g_ref, be_ref,
                      wq_ref, bq_ref, wk_ref, bk_ref, wv_ref, bv_ref,
                      wo_ref, bo_ref, o_ref, a_merged,
                      *, heads, compute_dtype, approx_recip):
    Bb, N, D = x_ref.shape
    dk = D // heads

    # ---- LayerNorm (f32, eps=1e-5, biased variance, as nn.LayerNorm) ----
    x = x_ref[...]
    if x.dtype != jnp.float32:
        x = x.astype(jnp.float32)
    mean = jnp.mean(x, axis=-1, keepdims=True)
    var = jnp.mean(jnp.square(x - mean), axis=-1, keepdims=True)
    xn = (x - mean) * jax.lax.rsqrt(var + 1e-5)
    xn = xn * g_ref[0] + be_ref[0]                       # (Bb, N, D) f32

    # ---- full-width Q/K/V projections: (Bb*N, D) @ (D, D), K = D deep ----
    xn2 = xn.reshape(Bb * N, D).astype(compute_dtype)

    def proj(w_ref, b_ref):
        y = jnp.dot(xn2, w_ref[...], preferred_element_type=jnp.float32)
        return (y + b_ref[0]).reshape(Bb, N, D)          # f32

    q = proj(wq_ref, bq_ref)        # 1/sqrt(dk) pre-folded into wq/bq
    k = proj(wk_ref, bk_ref)
    v = proj(wv_ref, bv_ref)

    # ---- per-head attention; merged heads staged into VMEM scratch ----
    for h in range(heads):
        lo, hi = h * dk, (h + 1) * dk
        qh = q[:, :, lo:hi].astype(compute_dtype)        # (Bb, N, dk)
        kh = k[:, :, lo:hi].astype(compute_dtype)
        vh = v[:, :, lo:hi].astype(compute_dtype)

        s = jnp.einsum("bnd,bmd->bnm", qh, kh,
                       preferred_element_type=jnp.float32)   # (Bb, N, N)
        s = s - jnp.max(s, axis=-1, keepdims=True)
        p = jnp.exp(s)
        l = jnp.sum(p, axis=-1, keepdims=True)           # (Bb, N, 1)

        a = jnp.einsum("bnm,bmd->bnd", p.astype(compute_dtype), vh,
                       preferred_element_type=jnp.float32)   # (Bb, N, dk)
        # Post-PV softmax normalization: O(N*dk) multiplies instead of O(N^2).
        a = a * pl.reciprocal(l, approx=approx_recip)

        a_merged[:, lo:hi] = a.reshape(Bb * N, dk).astype(compute_dtype)

    # ---- fused head-merge + to_out projection (single K = D contraction) ----
    out = jnp.dot(a_merged[...], wo_ref[...],
                  preferred_element_type=jnp.float32) + bo_ref[0]
    o_ref[...] = out.reshape(Bb, N, D).astype(o_ref.dtype)


def attention_block(x, params, *, heads, compute_dtype=jnp.float32,
                    batch_block=1):
    """x: (B, N, D).  params: wq/wk/wv/wo (D, D) stored so y = x @ W + b,
    biases / gamma / beta shaped (1, D).  compute_dtype=bf16 recommended on
    v5e/v6e/v7x (f32 accumulation, f32 LayerNorm/softmax)."""
    B, N, D = x.shape
    assert D % heads == 0, "dim must be divisible by heads"
    dk = D // heads
    # TODO(synk): heads == 1 (to_out = nn.Identity) path not specialized;
    # callers should pass wo = I, bo = 0 in that case.
    Bb = batch_block
    assert B % Bb == 0
    scale = dk ** -0.5

    cd = jnp.dtype(compute_dtype)
    # Fold 1/sqrt(dk) into Wq/bq and cast weights to compute_dtype up front
    # (halves weight DMA / VMEM on the bf16 path, no per-step casts).
    wq = (params["wq"] * scale).astype(cd)
    bq = params["bq"] * scale
    wk = params["wk"].astype(cd)
    wv = params["wv"].astype(cd)
    wo = params["wo"].astype(cd)

    approx = cd != jnp.dtype(jnp.float32)
    kernel = functools.partial(_attention_kernel, heads=heads,
                               compute_dtype=cd, approx_recip=approx)

    x_spec = pl.BlockSpec((Bb, N, D), lambda b: (b, 0, 0))
    vec_spec = pl.BlockSpec((1, D), lambda b: (0, 0))
    w_spec = pl.BlockSpec((D, D), lambda b: (0, 0))

    return pl.pallas_call(
        kernel,
        out_shape=jax.ShapeDtypeStruct((B, N, D), x.dtype),
        grid_spec=pltpu.PrefetchScalarGridSpec(
            num_scalar_prefetch=0,
            grid=(B // Bb,),                       # >= 2 steps: pipelined DMA,
            in_specs=[                             # megacore-shardable on v7x
                x_spec,
                vec_spec, vec_spec,                # layernorm gamma, beta
                w_spec, vec_spec,                  # Wq (pre-scaled), bq
                w_spec, vec_spec,                  # Wk, bk
                w_spec, vec_spec,                  # Wv, bv
                w_spec, vec_spec,                  # Wo, bo
            ],
            out_specs=x_spec,
            scratch_shapes=[pltpu.VMEM((Bb * N, D), cd)],   # merged heads
        ),
        compiler_params=pltpu.CompilerParams(
            dimension_semantics=("parallel",)),
    )(x,
      params["gamma"], params["beta"],
      wq, bq, wk, params["bk"], wv, params["bv"],
      wo, params["bo"])


def _reference(x, params, heads):
    """Pure-JAX reference (matches the PyTorch module)."""
    B, N, D = x.shape
    dk = D // heads
    with jax.default_matmul_precision("highest"):
        mean = jnp.mean(x, axis=-1, keepdims=True)
        var = jnp.mean((x - mean) ** 2, axis=-1, keepdims=True)
        xn = (x - mean) / jnp.sqrt(var + 1e-5)
        xn = xn * params["gamma"][0] + params["beta"][0]
        q = xn @ params["wq"] + params["bq"][0]
        k = xn @ params["wk"] + params["bk"][0]
        v = xn @ params["wv"] + params["bv"][0]

        def split(t):  # b n (h d) -> b h n d
            return t.reshape(B, N, heads, dk).transpose(0, 2, 1, 3)

        qh, kh, vh = split(q), split(k), split(v)
        s = jnp.einsum("bhnd,bhmd->bhnm", qh, kh) * dk ** -0.5
        p = jax.nn.softmax(s, axis=-1)
        a = jnp.einsum("bhnm,bhmd->bhnd", p, vh)
        a = a.transpose(0, 2, 1, 3).reshape(B, N, D)
        return a @ params["wo"] + params["bo"][0]


if __name__ == "__main__":
    B, N, D, H = 2, 8, 32, 8

    key = jax.random.PRNGKey(0)
    ks = jax.random.split(key, 12)

    def init_mat(k):
        return jax.random.normal(k, (D, D), jnp.float32) * 0.05

    def init_vec(k):
        return jax.random.normal(k, (1, D), jnp.float32) * 0.05

    params = {
        "gamma": jnp.ones((1, D), jnp.float32),
        "beta": jnp.zeros((1, D), jnp.float32),
        "wq": init_mat(ks[0]), "bq": init_vec(ks[1]),
        "wk": init_mat(ks[2]), "bk": init_vec(ks[3]),
        "wv": init_mat(ks[4]), "bv": init_vec(ks[5]),
        "wo": init_mat(ks[6]), "bo": init_vec(ks[7]),
    }

    x = jax.random.normal(ks[8], (B, N, D), jnp.float32)

    ref = _reference(x, params, H)

    # f32 path: strict check against the reference.
    out_f32 = jax.block_until_ready(
        attention_block(x, params, heads=H, compute_dtype=jnp.float32))
    np.testing.assert_allclose(np.asarray(out_f32), np.asarray(ref),
                               rtol=1e-4, atol=1e-4)

    # bf16-MXU path (f32 accumulation, approx EUP reciprocal): looser check.
    out_bf16 = jax.block_until_ready(
        attention_block(x, params, heads=H, compute_dtype=jnp.bfloat16))
    np.testing.assert_allclose(np.asarray(out_bf16), np.asarray(ref),
                               rtol=2e-2, atol=2e-2)

    print("KERNEL_OK")
</pallas_src>

<mosaic_0001>
module attributes {stable_mosaic.version = 11 : i64} {
  func.func @_attention_kernel(%arg0: i32, %arg1: memref<1x8x32xf32, #tpu.memory_space<vmem>>, %arg2: memref<1x32xf32, #tpu.memory_space<vmem>>, %arg3: memref<1x32xf32, #tpu.memory_space<vmem>>, %arg4: memref<32x32xf32, #tpu.memory_space<vmem>>, %arg5: memref<1x32xf32, #tpu.memory_space<vmem>>, %arg6: memref<32x32xf32, #tpu.memory_space<vmem>>, %arg7: memref<1x32xf32, #tpu.memory_space<vmem>>, %arg8: memref<32x32xf32, #tpu.memory_space<vmem>>, %arg9: memref<1x32xf32, #tpu.memory_space<vmem>>, %arg10: memref<32x32xf32, #tpu.memory_space<vmem>>, %arg11: memref<1x32xf32, #tpu.memory_space<vmem>>, %arg12: memref<1x8x32xf32, #tpu.memory_space<vmem>>, %arg13: memref<8x32xf32, #tpu.memory_space<vmem>>) attributes {dimension_semantics = [#tpu.dimension_semantics<parallel>], iteration_bounds = array<i64: 2>, scalar_prefetch = 0 : i64, scratch_operands = 1 : i64, tpu.core_type = #tpu.core_type<tc>, window_params = [{transform_indices = @transform_0, window_bounds = array<i64: 1, 8, 32>}, {pipeline_mode = #tpu.pipeline_mode<synchronous>, transform_indices = @transform_1, window_bounds = array<i64: 1, 32>}, {pipeline_mode = #tpu.pipeline_mode<synchronous>, transform_indices = @transform_2, window_bounds = array<i64: 1, 32>}, {pipeline_mode = #tpu.pipeline_mode<synchronous>, transform_indices = @transform_3, window_bounds = array<i64: 32, 32>}, {pipeline_mode = #tpu.pipeline_mode<synchronous>, transform_indices = @transform_4, window_bounds = array<i64: 1, 32>}, {pipeline_mode = #tpu.pipeline_mode<synchronous>, transform_indices = @transform_5, window_bounds = array<i64: 32, 32>}, {pipeline_mode = #tpu.pipeline_mode<synchronous>, transform_indices = @transform_6, window_bounds = array<i64: 1, 32>}, {pipeline_mode = #tpu.pipeline_mode<synchronous>, transform_indices = @transform_7, window_bounds = array<i64: 32, 32>}, {pipeline_mode = #tpu.pipeline_mode<synchronous>, transform_indices = @transform_8, window_bounds = array<i64: 1, 32>}, {pipeline_mode = #tpu.pipeline_mode<synchronous>, transform_indices = @transform_9, window_bounds = array<i64: 32, 32>}, {pipeline_mode = #tpu.pipeline_mode<synchronous>, transform_indices = @transform_10, window_bounds = array<i64: 1, 32>}, {transform_indices = @transform_11, window_bounds = array<i64: 1, 8, 32>}]} {
    %c0 = arith.constant 0 : index
    %c0_0 = arith.constant 0 : index
    %c0_1 = arith.constant 0 : index
    %0 = vector.load %arg1[%c0, %c0_0, %c0_1] : memref<1x8x32xf32, #tpu.memory_space<vmem>>, vector<1x8x32xf32>
    %cst = arith.constant dense<0.000000e+00> : vector<1x8xf32>
    %1 = vector.multi_reduction <add>, %0, %cst [2] : vector<1x8x32xf32> to vector<1x8xf32>
    %2 = vector.shape_cast %1 : vector<1x8xf32> to vector<1x8x1xf32>
    %cst_2 = arith.constant 3.200000e+01 : f32
    %3 = vector.broadcast %cst_2 : f32 to vector<1x8x1xf32>
    %4 = arith.divf %2, %3 : vector<1x8x1xf32>
    %5 = vector.broadcast %4 : vector<1x8x1xf32> to vector<1x8x32xf32>
    %6 = arith.subf %0, %5 : vector<1x8x32xf32>
    %7 = arith.mulf %6, %6 : vector<1x8x32xf32>
    %cst_3 = arith.constant dense<0.000000e+00> : vector<1x8xf32>
    %8 = vector.multi_reduction <add>, %7, %cst_3 [2] : vector<1x8x32xf32> to vector<1x8xf32>
    %9 = vector.shape_cast %8 : vector<1x8xf32> to vector<1x8x1xf32>
    %cst_4 = arith.constant 3.200000e+01 : f32
    %10 = vector.broadcast %cst_4 : f32 to vector<1x8x1xf32>
    %11 = arith.divf %9, %10 : vector<1x8x1xf32>
    %12 = vector.broadcast %4 : vector<1x8x1xf32> to vector<1x8x32xf32>
    %13 = arith.subf %0, %12 : vector<1x8x32xf32>
    %cst_5 = arith.constant 9.99999974E-6 : f32
    %14 = vector.broadcast %cst_5 : f32 to vector<1x8x1xf32>
    %15 = arith.addf %11, %14 : vector<1x8x1xf32>
    %16 = math.rsqrt %15 : vector<1x8x1xf32>
    %17 = vector.broadcast %16 : vector<1x8x1xf32> to vector<1x8x32xf32>
    %18 = arith.mulf %13, %17 : vector<1x8x32xf32>
    %c0_6 = arith.constant 0 : index
    %c0_7 = arith.constant 0 : index
    %19 = vector.load %arg2[%c0_6, %c0_7] : memref<1x32xf32, #tpu.memory_space<vmem>>, vector<1x32xf32>
    %20 = vector.shape_cast %19 : vector<1x32xf32> to vector<32xf32>
    %21 = vector.shape_cast %20 : vector<32xf32> to vector<1x1x32xf32>
    %22 = vector.broadcast %21 : vector<1x1x32xf32> to vector<1x8x32xf32>
    %23 = arith.mulf %18, %22 : vector<1x8x32xf32>
    %c0_8 = arith.constant 0 : index
    %c0_9 = arith.constant 0 : index
    %24 = vector.load %arg3[%c0_8, %c0_9] : memref<1x32xf32, #tpu.memory_space<vmem>>, vector<1x32xf32>
    %25 = vector.shape_cast %24 : vector<1x32xf32> to vector<32xf32>
    %26 = vector.shape_cast %25 : vector<32xf32> to vector<1x1x32xf32>
    %27 = vector.broadcast %26 : vector<1x1x32xf32> to vector<1x8x32xf32>
    %28 = arith.addf %23, %27 : vector<1x8x32xf32>
    %29 = vector.shape_cast %28 : vector<1x8x32xf32> to vector<8x32xf32>
    %c0_10 = arith.constant 0 : index
    %c0_11 = arith.constant 0 : index
    %30 = vector.load %arg4[%c0_10, %c0_11] : memref<32x32xf32, #tpu.memory_space<vmem>>, vector<32x32xf32>
    %cst_12 = arith.constant dense<0.000000e+00> : vector<8x32xf32>
    %31 = tpu.matmul %29, %30, %cst_12 {dimension_numbers = #tpu.dot_dimension_numbers<[1], [0], [0], [1], [0, 0, 1, 1], [], []>} : vector<8x32xf32>, vector<32x32xf32>, vector<8x32xf32> -> vector<8x32xf32>
    %c0_13 = arith.constant 0 : index
    %c0_14 = arith.constant 0 : index
    %32 = vector.load %arg5[%c0_13, %c0_14] : memref<1x32xf32, #tpu.memory_space<vmem>>, vector<1x32xf32>
    %33 = vector.shape_cast %32 : vector<1x32xf32> to vector<32xf32>
    %34 = vector.shape_cast %33 : vector<32xf32> to vector<1x32xf32>
    %35 = vector.broadcast %34 : vector<1x32xf32> to vector<8x32xf32>
    %36 = arith.addf %31, %35 : vector<8x32xf32>
    %37 = vector.shape_cast %36 : vector<8x32xf32> to vector<1x8x32xf32>
    %c0_15 = arith.constant 0 : index
    %c0_16 = arith.constant 0 : index
    %38 = vector.load %arg6[%c0_15, %c0_16] : memref<32x32xf32, #tpu.memory_space<vmem>>, vector<32x32xf32>
    %cst_17 = arith.constant dense<0.000000e+00> : vector<8x32xf32>
    %39 = tpu.matmul %29, %38, %cst_17 {dimension_numbers = #tpu.dot_dimension_numbers<[1], [0], [0], [1], [0, 0, 1, 1], [], []>} : vector<8x32xf32>, vector<32x32xf32>, vector<8x32xf32> -> vector<8x32xf32>
    %c0_18 = arith.constant 0 : index
    %c0_19 = arith.constant 0 : index
    %40 = vector.load %arg7[%c0_18, %c0_19] : memref<1x32xf32, #tpu.memory_space<vmem>>, vector<1x32xf32>
    %41 = vector.shape_cast %40 : vector<1x32xf32> to vector<32xf32>
    %42 = vector.shape_cast %41 : vector<32xf32> to vector<1x32xf32>
    %43 = vector.broadcast %42 : vector<1x32xf32> to vector<8x32xf32>
    %44 = arith.addf %39, %43 : vector<8x32xf32>
    %45 = vector.shape_cast %44 : vector<8x32xf32> to vector<1x8x32xf32>
    %c0_20 = arith.constant 0 : index
    %c0_21 = arith.constant 0 : index
    %46 = vector.load %arg8[%c0_20, %c0_21] : memref<32x32xf32, #tpu.memory_space<vmem>>, vector<32x32xf32>
    %cst_22 = arith.constant dense<0.000000e+00> : vector<8x32xf32>
    %47 = tpu.matmul %29, %46, %cst_22 {dimension_numbers = #tpu.dot_dimension_numbers<[1], [0], [0], [1], [0, 0, 1, 1], [], []>} : vector<8x32xf32>, vector<32x32xf32>, vector<8x32xf32> -> vector<8x32xf32>
    %c0_23 = arith.constant 0 : index
    %c0_24 = arith.constant 0 : index
    %48 = vector.load %arg9[%c0_23, %c0_24] : memref<1x32xf32, #tpu.memory_space<vmem>>, vector<1x32xf32>
    %49 = vector.shape_cast %48 : vector<1x32xf32> to vector<32xf32>
    %50 = vector.shape_cast %49 : vector<32xf32> to vector<1x32xf32>
    %51 = vector.broadcast %50 : vector<1x32xf32> to vector<8x32xf32>
    %52 = arith.addf %47, %51 : vector<8x32xf32>
    %53 = vector.shape_cast %52 : vector<8x32xf32> to vector<1x8x32xf32>
    %54 = vector.extract_strided_slice %37 {offsets = [0, 0, 0], sizes = [1, 8, 4], strides = [1, 1, 1]} : vector<1x8x32xf32> to vector<1x8x4xf32>
    %55 = vector.extract_strided_slice %45 {offsets = [0, 0, 0], sizes = [1, 8, 4], strides = [1, 1, 1]} : vector<1x8x32xf32> to vector<1x8x4xf32>
    %56 = vector.extract_strided_slice %53 {offsets = [0, 0, 0], sizes = [1, 8, 4], strides = [1, 1, 1]} : vector<1x8x32xf32> to vector<1x8x4xf32>
    "tpu.trace_start"() <{level = 10 : i32, message = "bnd,bmd->bnm"}> : () -> ()
    %cst_25 = arith.constant dense<0.000000e+00> : vector<1x8x8xf32>
    %57 = tpu.matmul %54, %55, %cst_25 {dimension_numbers = #tpu.dot_dimension_numbers<[2], [2], [1], [1], [0, 0, 0, 1, 1, 1], [0], [0]>} : vector<1x8x4xf32>, vector<1x8x4xf32>, vector<1x8x8xf32> -> vector<1x8x8xf32>
    "tpu.trace_stop"() : () -> ()
    %cst_26 = arith.constant dense<0xFF800000> : vector<1x8xf32>
    %58 = vector.multi_reduction <maximumf>, %57, %cst_26 [2] : vector<1x8x8xf32> to vector<1x8xf32>
    %59 = vector.shape_cast %58 : vector<1x8xf32> to vector<1x8x1xf32>
    %60 = vector.broadcast %59 : vector<1x8x1xf32> to vector<1x8x8xf32>
    %61 = arith.subf %57, %60 : vector<1x8x8xf32>
    %62 = math.exp %61 : vector<1x8x8xf32>
    %cst_27 = arith.constant dense<0.000000e+00> : vector<1x8xf32>
    %63 = vector.multi_reduction <add>, %62, %cst_27 [2] : vector<1x8x8xf32> to vector<1x8xf32>
    %64 = vector.shape_cast %63 : vector<1x8xf32> to vector<1x8x1xf32>
    "tpu.trace_start"() <{level = 10 : i32, message = "bnm,bmd->bnd"}> : () -> ()
    %cst_28 = arith.constant dense<0.000000e+00> : vector<1x8x4xf32>
    %65 = tpu.matmul %62, %56, %cst_28 {dimension_numbers = #tpu.dot_dimension_numbers<[2], [1], [1], [2], [0, 0, 0, 1, 1, 2], [0], [0]>} : vector<1x8x8xf32>, vector<1x8x4xf32>, vector<1x8x4xf32> -> vector<1x8x4xf32>
    "tpu.trace_stop"() : () -> ()
    %66 = tpu.reciprocal %64 : vector<1x8x1xf32> -> vector<1x8x1xf32>
    %67 = vector.broadcast %66 : vector<1x8x1xf32> to vector<1x8x4xf32>
    %68 = arith.mulf %65, %67 : vector<1x8x4xf32>
    %69 = vector.shape_cast %68 : vector<1x8x4xf32> to vector<8x4xf32>
    %c0_29 = arith.constant 0 : index
    %c0_30 = arith.constant 0 : index
    %70 = vector.load %arg13[%c0_29, %c0_30] : memref<8x32xf32, #tpu.memory_space<vmem>>, vector<8x4xf32>
    tpu.vector_store %arg13[%c0_29, %c0_30], %69 {strides = array<i32>} : memref<8x32xf32, #tpu.memory_space<vmem>>, vector<8x4xf32>,
    %71 = vector.extract_strided_slice %37 {offsets = [0, 0, 4], sizes = [1, 8, 4], strides = [1, 1, 1]} : vector<1x8x32xf32> to vector<1x8x4xf32>
    %72 = vector.extract_strided_slice %45 {offsets = [0, 0, 4], sizes = [1, 8, 4], strides = [1, 1, 1]} : vector<1x8x32xf32> to vector<1x8x4xf32>
    %73 = vector.extract_strided_slice %53 {offsets = [0, 0, 4], sizes = [1, 8, 4], strides = [1, 1, 1]} : vector<1x8x32xf32> to vector<1x8x4xf32>
    "tpu.trace_start"() <{level = 10 : i32, message = "bnd,bmd->bnm"}> : () -> ()
    %cst_31 = arith.constant dense<0.000000e+00> : vector<1x8x8xf32>
    %74 = tpu.matmul %71, %72, %cst_31 {dimension_numbers = #tpu.dot_dimension_numbers<[2], [2], [1], [1], [0, 0, 0, 1, 1, 1], [0], [0]>} : vector<1x8x4xf32>, vector<1x8x4xf32>, vector<1x8x8xf32> -> vector<1x8x8xf32>
    "tpu.trace_stop"() : () -> ()
    %cst_32 = arith.constant dense<0xFF800000> : vector<1x8xf32>
    %75 = vector.multi_reduction <maximumf>, %74, %cst_32 [2] : vector<1x8x8xf32> to vector<1x8xf32>
    %76 = vector.shape_cast %75 : vector<1x8xf32> to vector<1x8x1xf32>
    %77 = vector.broadcast %76 : vector<1x8x1xf32> to vector<1x8x8xf32>
    %78 = arith.subf %74, %77 : vector<1x8x8xf32>
    %79 = math.exp %78 : vector<1x8x8xf32>
    %cst_33 = arith.constant dense<0.000000e+00> : vector<1x8xf32>
    %80 = vector.multi_reduction <add>, %79, %cst_33 [2] : vector<1x8x8xf32> to vector<1x8xf32>
    %81 = vector.shape_cast %80 : vector<1x8xf32> to vector<1x8x1xf32>
    "tpu.trace_start"() <{level = 10 : i32, message = "bnm,bmd->bnd"}> : () -> ()
    %cst_34 = arith.constant dense<0.000000e+00> : vector<1x8x4xf32>
    %82 = tpu.matmul %79, %73, %cst_34 {dimension_numbers = #tpu.dot_dimension_numbers<[2], [1], [1], [2], [0, 0, 0, 1, 1, 2], [0], [0]>} : vector<1x8x8xf32>, vector<1x8x4xf32>, vector<1x8x4xf32> -> vector<1x8x4xf32>
    "tpu.trace_stop"() : () -> ()
    %83 = tpu.reciprocal %81 : vector<1x8x1xf32> -> vector<1x8x1xf32>
    %84 = vector.broadcast %83 : vector<1x8x1xf32> to vector<1x8x4xf32>
    %85 = arith.mulf %82, %84 : vector<1x8x4xf32>
    %86 = vector.shape_cast %85 : vector<1x8x4xf32> to vector<8x4xf32>
    %c0_35 = arith.constant 0 : index
    %c4 = arith.constant 4 : index
    %87 = vector.load %arg13[%c0_35, %c4] : memref<8x32xf32, #tpu.memory_space<vmem>>, vector<8x4xf32>
    tpu.vector_store %arg13[%c0_35, %c4], %86 {strides = array<i32>} : memref<8x32xf32, #tpu.memory_space<vmem>>, vector<8x4xf32>,
    %88 = vector.extract_strided_slice %37 {offsets = [0, 0, 8], sizes = [1, 8, 4], strides = [1, 1, 1]} : vector<1x8x32xf32> to vector<1x8x4xf32>
    %89 = vector.extract_strided_slice %45 {offsets = [0, 0, 8], sizes = [1, 8, 4], strides = [1, 1, 1]} : vector<1x8x32xf32> to vector<1x8x4xf32>
    %90 = vector.extract_strided_slice %53 {offsets = [0, 0, 8], sizes = [1, 8, 4], strides = [1, 1, 1]} : vector<1x8x32xf32> to vector<1x8x4xf32>
    "tpu.trace_start"() <{level = 10 : i32, message = "bnd,bmd->bnm"}> : () -> ()
    %cst_36 = arith.constant dense<0.000000e+00> : vector<1x8x8xf32>
    %91 = tpu.matmul %88, %89, %cst_36 {dimension_numbers = #tpu.dot_dimension_numbers<[2], [2], [1], [1], [0, 0, 0, 1, 1, 1], [0], [0]>} : vector<1x8x4xf32>, vector<1x8x4xf32>, vector<1x8x8xf32> -> vector<1x8x8xf32>
    "tpu.trace_stop"() : () -> ()
    %cst_37 = arith.constant dense<0xFF800000> : vector<1x8xf32>
    %92 = vector.multi_reduction <maximumf>, %91, %cst_37 [2] : vector<1x8x8xf32> to vector<1x8xf32>
    %93 = vector.shape_cast %92 : vector<1x8xf32> to vector<1x8x1xf32>
    %94 = vector.broadcast %93 : vector<1x8x1xf32> to vector<1x8x8xf32>
    %95 = arith.subf %91, %94 : vector<1x8x8xf32>
    %96 = math.exp %95 : vector<1x8x8xf32>
    %cst_38 = arith.constant dense<0.000000e+00> : vector<1x8xf32>
    %97 = vector.multi_reduction <add>, %96, %cst_38 [2] : vector<1x8x8xf32> to vector<1x8xf32>
    %98 = vector.shape_cast %97 : vector<1x8xf32> to vector<1x8x1xf32>
    "tpu.trace_start"() <{level = 10 : i32, message = "bnm,bmd->bnd"}> : () -> ()
    %cst_39 = arith.constant dense<0.000000e+00> : vector<1x8x4xf32>
    %99 = tpu.matmul %96, %90, %cst_39 {dimension_numbers = #tpu.dot_dimension_numbers<[2], [1], [1], [2], [0, 0, 0, 1, 1, 2], [0], [0]>} : vector<1x8x8xf32>, vector<1x8x4xf32>, vector<1x8x4xf32> -> vector<1x8x4xf32>
    "tpu.trace_stop"() : () -> ()
    %100 = tpu.reciprocal %98 : vector<1x8x1xf32> -> vector<1x8x1xf32>
    %101 = vector.broadcast %100 : vector<1x8x1xf32> to vector<1x8x4xf32>
    %102 = arith.mulf %99, %101 : vector<1x8x4xf32>
    %103 = vector.shape_cast %102 : vector<1x8x4xf32> to vector<8x4xf32>
    %c0_40 = arith.constant 0 : index
    %c8 = arith.constant 8 : index
    %104 = vector.load %arg13[%c0_40, %c8] : memref<8x32xf32, #tpu.memory_space<vmem>>, vector<8x4xf32>
    tpu.vector_store %arg13[%c0_40, %c8], %103 {strides = array<i32>} : memref<8x32xf32, #tpu.memory_space<vmem>>, vector<8x4xf32>,
    %105 = vector.extract_strided_slice %37 {offsets = [0, 0, 12], sizes = [1, 8, 4], strides = [1, 1, 1]} : vector<1x8x32xf32> to vector<1x8x4xf32>
    %106 = vector.extract_strided_slice %45 {offsets = [0, 0, 12], sizes = [1, 8, 4], strides = [1, 1, 1]} : vector<1x8x32xf32> to vector<1x8x4xf32>
    %107 = vector.extract_strided_slice %53 {offsets = [0, 0, 12], sizes = [1, 8, 4], strides = [1, 1, 1]} : vector<1x8x32xf32> to vector<1x8x4xf32>
    "tpu.trace_start"() <{level = 10 : i32, message = "bnd,bmd->bnm"}> : () -> ()
    %cst_41 = arith.constant dense<0.000000e+00> : vector<1x8x8xf32>
    %108 = tpu.matmul %105, %106, %cst_41 {dimension_numbers = #tpu.dot_dimension_numbers<[2], [2], [1], [1], [0, 0, 0, 1, 1, 1], [0], [0]>} : vector<1x8x4xf32>, vector<1x8x4xf32>, vector<1x8x8xf32> -> vector<1x8x8xf32>
    "tpu.trace_stop"() : () -> ()
    %cst_42 = arith.constant dense<0xFF800000> : vector<1x8xf32>
    %109 = vector.multi_reduction <maximumf>, %108, %cst_42 [2] : vector<1x8x8xf32> to vector<1x8xf32>
    %110 = vector.shape_cast %109 : vector<1x8xf32> to vector<1x8x1xf32>
    %111 = vector.broadcast %110 : vector<1x8x1xf32> to vector<1x8x8xf32>
    %112 = arith.subf %108, %111 : vector<1x8x8xf32>
    %113 = math.exp %112 : vector<1x8x8xf32>
    %cst_43 = arith.constant dense<0.000000e+00> : vector<1x8xf32>
    %114 = vector.multi_reduction <add>, %113, %cst_43 [2] : vector<1x8x8xf32> to vector<1x8xf32>
    %115 = vector.shape_cast %114 : vector<1x8xf32> to vector<1x8x1xf32>
    "tpu.trace_start"() <{level = 10 : i32, message = "bnm,bmd->bnd"}> : () -> ()
    %cst_44 = arith.constant dense<0.000000e+00> : vector<1x8x4xf32>
    %116 = tpu.matmul %113, %107, %cst_44 {dimension_numbers = #tpu.dot_dimension_numbers<[2], [1], [1], [2], [0, 0, 0, 1, 1, 2], [0], [0]>} : vector<1x8x8xf32>, vector<1x8x4xf32>, vector<1x8x4xf32> -> vector<1x8x4xf32>
    "tpu.trace_stop"() : () -> ()
    %117 = tpu.reciprocal %115 : vector<1x8x1xf32> -> vector<1x8x1xf32>
    %118 = vector.broadcast %117 : vector<1x8x1xf32> to vector<1x8x4xf32>
    %119 = arith.mulf %116, %118 : vector<1x8x4xf32>
    %120 = vector.shape_cast %119 : vector<1x8x4xf32> to vector<8x4xf32>
    %c0_45 = arith.constant 0 : index
    %c12 = arith.constant 12 : index
    %121 = vector.load %arg13[%c0_45, %c12] : memref<8x32xf32, #tpu.memory_space<vmem>>, vector<8x4xf32>
    tpu.vector_store %arg13[%c0_45, %c12], %120 {strides = array<i32>} : memref<8x32xf32, #tpu.memory_space<vmem>>, vector<8x4xf32>,
    %122 = vector.extract_strided_slice %37 {offsets = [0, 0, 16], sizes = [1, 8, 4], strides = [1, 1, 1]} : vector<1x8x32xf32> to vector<1x8x4xf32>
    %123 = vector.extract_strided_slice %45 {offsets = [0, 0, 16], sizes = [1, 8, 4], strides = [1, 1, 1]} : vector<1x8x32xf32> to vector<1x8x4xf32>
    %124 = vector.extract_strided_slice %53 {offsets = [0, 0, 16], sizes = [1, 8, 4], strides = [1, 1, 1]} : vector<1x8x32xf32> to vector<1x8x4xf32>
    "tpu.trace_start"() <{level = 10 : i32, message = "bnd,bmd->bnm"}> : () -> ()
    %cst_46 = arith.constant dense<0.000000e+00> : vector<1x8x8xf32>
    %125 = tpu.matmul %122, %123, %cst_46 {dimension_numbers = #tpu.dot_dimension_numbers<[2], [2], [1], [1], [0, 0, 0, 1, 1, 1], [0], [0]>} : vector<1x8x4xf32>, vector<1x8x4xf32>, vector<1x8x8xf32> -> vector<1x8x8xf32>
    "tpu.trace_stop"() : () -> ()
    %cst_47 = arith.constant dense<0xFF800000> : vector<1x8xf32>
    %126 = vector.multi_reduction <maximumf>, %125, %cst_47 [2] : vector<1x8x8xf32> to vector<1x8xf32>
    %127 = vector.shape_cast %126 : vector<1x8xf32> to vector<1x8x1xf32>
    %128 = vector.broadcast %127 : vector<1x8x1xf32> to vector<1x8x8xf32>
    %129 = arith.subf %125, %128 : vector<1x8x8xf32>
    %130 = math.exp %129 : vector<1x8x8xf32>
    %cst_48 = arith.constant dense<0.000000e+00> : vector<1x8xf32>
    %131 = vector.multi_reduction <add>, %130, %cst_48 [2] : vector<1x8x8xf32> to vector<1x8xf32>
    %132 = vector.shape_cast %131 : vector<1x8xf32> to vector<1x8x1xf32>
    "tpu.trace_start"() <{level = 10 : i32, message = "bnm,bmd->bnd"}> : () -> ()
    %cst_49 = arith.constant dense<0.000000e+00> : vector<1x8x4xf32>
    %133 = tpu.matmul %130, %124, %cst_49 {dimension_numbers = #tpu.dot_dimension_numbers<[2], [1], [1], [2], [0, 0, 0, 1, 1, 2], [0], [0]>} : vector<1x8x8xf32>, vector<1x8x4xf32>, vector<1x8x4xf32> -> vector<1x8x4xf32>
    "tpu.trace_stop"() : () -> ()
    %134 = tpu.reciprocal %132 : vector<1x8x1xf32> -> vector<1x8x1xf32>
    %135 = vector.broadcast %134 : vector<1x8x1xf32> to vector<1x8x4xf32>
    %136 = arith.mulf %133, %135 : vector<1x8x4xf32>
    %137 = vector.shape_cast %136 : vector<1x8x4xf32> to vector<8x4xf32>
    %c0_50 = arith.constant 0 : index
    %c16 = arith.constant 16 : index
    %138 = vector.load %arg13[%c0_50, %c16] : memref<8x32xf32, #tpu.memory_space<vmem>>, vector<8x4xf32>
    tpu.vector_store %arg13[%c0_50, %c16], %137 {strides = array<i32>} : memref<8x32xf32, #tpu.memory_space<vmem>>, vector<8x4xf32>,
    %139 = vector.extract_strided_slice %37 {offsets = [0, 0, 20], sizes = [1, 8, 4], strides = [1, 1, 1]} : vector<1x8x32xf32> to vector<1x8x4xf32>
    %140 = vector.extract_strided_slice %45 {offsets = [0, 0, 20], sizes = [1, 8, 4], strides = [1, 1, 1]} : vector<1x8x32xf32> to vector<1x8x4xf32>
    %141 = vector.extract_strided_slice %53 {offsets = [0, 0, 20], sizes = [1, 8, 4], strides = [1, 1, 1]} : vector<1x8x32xf32> to vector<1x8x4xf32>
    "tpu.trace_start"() <{level = 10 : i32, message = "bnd,bmd->bnm"}> : () -> ()
    %cst_51 = arith.constant dense<0.000000e+00> : vector<1x8x8xf32>
    %142 = tpu.matmul %139, %140, %cst_51 {dimension_numbers = #tpu.dot_dimension_numbers<[2], [2], [1], [1], [0, 0, 0, 1, 1, 1], [0], [0]>} : vector<1x8x4xf32>, vector<1x8x4xf32>, vector<1x8x8xf32> -> vector<1x8x8xf32>
    "tpu.trace_stop"() : () -> ()
    %cst_52 = arith.constant dense<0xFF800000> : vector<1x8xf32>
    %143 = vector.multi_reduction <maximumf>, %142, %cst_52 [2] : vector<1x8x8xf32> to vector<1x8xf32>
    %144 = vector.shape_cast %143 : vector<1x8xf32> to vector<1x8x1xf32>
    %145 = vector.broadcast %144 : vector<1x8x1xf32> to vector<1x8x8xf32>
    %146 = arith.subf %142, %145 : vector<1x8x8xf32>
    %147 = math.exp %146 : vector<1x8x8xf32>
    %cst_53 = arith.constant dense<0.000000e+00> : vector<1x8xf32>
    %148 = vector.multi_reduction <add>, %147, %cst_53 [2] : vector<1x8x8xf32> to vector<1x8xf32>
    %149 = vector.shape_cast %148 : vector<1x8xf32> to vector<1x8x1xf32>
    "tpu.trace_start"() <{level = 10 : i32, message = "bnm,bmd->bnd"}> : () -> ()
    %cst_54 = arith.constant dense<0.000000e+00> : vector<1x8x4xf32>
    %150 = tpu.matmul %147, %141, %cst_54 {dimension_numbers = #tpu.dot_dimension_numbers<[2], [1], [1], [2], [0, 0, 0, 1, 1, 2], [0], [0]>} : vector<1x8x8xf32>, vector<1x8x4xf32>, vector<1x8x4xf32> -> vector<1x8x4xf32>
    "tpu.trace_stop"() : () -> ()
    %151 = tpu.reciprocal %149 : vector<1x8x1xf32> -> vector<1x8x1xf32>
    %152 = vector.broadcast %151 : vector<1x8x1xf32> to vector<1x8x4xf32>
    %153 = arith.mulf %150, %152 : vector<1x8x4xf32>
    %154 = vector.shape_cast %153 : vector<1x8x4xf32> to vector<8x4xf32>
    %c0_55 = arith.constant 0 : index
    %c20 = arith.constant 20 : index
    %155 = vector.load %arg13[%c0_55, %c20] : memref<8x32xf32, #tpu.memory_space<vmem>>, vector<8x4xf32>
    tpu.vector_store %arg13[%c0_55, %c20], %154 {strides = array<i32>} : memref<8x32xf32, #tpu.memory_space<vmem>>, vector<8x4xf32>,
    %156 = vector.extract_strided_slice %37 {offsets = [0, 0, 24], sizes = [1, 8, 4], strides = [1, 1, 1]} : vector<1x8x32xf32> to vector<1x8x4xf32>
    %157 = vector.extract_strided_slice %45 {offsets = [0, 0, 24], sizes = [1, 8, 4], strides = [1, 1, 1]} : vector<1x8x32xf32> to vector<1x8x4xf32>
    %158 = vector.extract_strided_slice %53 {offsets = [0, 0, 24], sizes = [1, 8, 4], strides = [1, 1, 1]} : vector<1x8x32xf32> to vector<1x8x4xf32>
    "tpu.trace_start"() <{level = 10 : i32, message = "bnd,bmd->bnm"}> : () -> ()
    %cst_56 = arith.constant dense<0.000000e+00> : vector<1x8x8xf32>
    %159 = tpu.matmul %156, %157, %cst_56 {dimension_numbers = #tpu.dot_dimension_numbers<[2], [2], [1], [1], [0, 0, 0, 1, 1, 1], [0], [0]>} : vector<1x8x4xf32>, vector<1x8x4xf32>, vector<1x8x8xf32> -> vector<1x8x8xf32>
    "tpu.trace_stop"() : () -> ()
    %cst_57 = arith.constant dense<0xFF800000> : vector<1x8xf32>
    %160 = vector.multi_reduction <maximumf>, %159, %cst_57 [2] : vector<1x8x8xf32> to vector<1x8xf32>
    %161 = vector.shape_cast %160 : vector<1x8xf32> to vector<1x8x1xf32>
    %162 = vector.broadcast %161 : vector<1x8x1xf32> to vector<1x8x8xf32>
    %163 = arith.subf %159, %162 : vector<1x8x8xf32>
    %164 = math.exp %163 : vector<1x8x8xf32>
    %cst_58 = arith.constant dense<0.000000e+00> : vector<1x8xf32>
    %165 = vector.multi_reduction <add>, %164, %cst_58 [2] : vector<1x8x8xf32> to vector<1x8xf32>
    %166 = vector.shape_cast %165 : vector<1x8xf32> to vector<1x8x1xf32>
    "tpu.trace_start"() <{level = 10 : i32, message = "bnm,bmd->bnd"}> : () -> ()
    %cst_59 = arith.constant dense<0.000000e+00> : vector<1x8x4xf32>
    %167 = tpu.matmul %164, %158, %cst_59 {dimension_numbers = #tpu.dot_dimension_numbers<[2], [1], [1], [2], [0, 0, 0, 1, 1, 2], [0], [0]>} : vector<1x8x8xf32>, vector<1x8x4xf32>, vector<1x8x4xf32> -> vector<1x8x4xf32>
    "tpu.trace_stop"() : () -> ()
    %168 = tpu.reciprocal %166 : vector<1x8x1xf32> -> vector<1x8x1xf32>
    %169 = vector.broadcast %168 : vector<1x8x1xf32> to vector<1x8x4xf32>
    %170 = arith.mulf %167, %169 : vector<1x8x4xf32>
    %171 = vector.shape_cast %170 : vector<1x8x4xf32> to vector<8x4xf32>
    %c0_60 = arith.constant 0 : index
    %c24 = arith.constant 24 : index
    %172 = vector.load %arg13[%c0_60, %c24] : memref<8x32xf32, #tpu.memory_space<vmem>>, vector<8x4xf32>
    tpu.vector_store %arg13[%c0_60, %c24], %171 {strides = array<i32>} : memref<8x32xf32, #tpu.memory_space<vmem>>, vector<8x4xf32>,
    %173 = vector.extract_strided_slice %37 {offsets = [0, 0, 28], sizes = [1, 8, 4], strides = [1, 1, 1]} : vector<1x8x32xf32> to vector<1x8x4xf32>
    %174 = vector.extract_strided_slice %45 {offsets = [0, 0, 28], sizes = [1, 8, 4], strides = [1, 1, 1]} : vector<1x8x32xf32> to vector<1x8x4xf32>
    %175 = vector.extract_strided_slice %53 {offsets = [0, 0, 28], sizes = [1, 8, 4], strides = [1, 1, 1]} : vector<1x8x32xf32> to vector<1x8x4xf32>
    "tpu.trace_start"() <{level = 10 : i32, message = "bnd,bmd->bnm"}> : () -> ()
    %cst_61 = arith.constant dense<0.000000e+00> : vector<1x8x8xf32>
    %176 = tpu.matmul %173, %174, %cst_61 {dimension_numbers = #tpu.dot_dimension_numbers<[2], [2], [1], [1], [0, 0, 0, 1, 1, 1], [0], [0]>} : vector<1x8x4xf32>, vector<1x8x4xf32>, vector<1x8x8xf32> -> vector<1x8x8xf32>
    "tpu.trace_stop"() : () -> ()
    %cst_62 = arith.constant dense<0xFF800000> : vector<1x8xf32>
    %177 = vector.multi_reduction <maximumf>, %176, %cst_62 [2] : vector<1x8x8xf32> to vector<1x8xf32>
    %178 = vector.shape_cast %177 : vector<1x8xf32> to vector<1x8x1xf32>
    %179 = vector.broadcast %178 : vector<1x8x1xf32> to vector<1x8x8xf32>
    %180 = arith.subf %176, %179 : vector<1x8x8xf32>
    %181 = math.exp %180 : vector<1x8x8xf32>
    %cst_63 = arith.constant dense<0.000000e+00> : vector<1x8xf32>
    %182 = vector.multi_reduction <add>, %181, %cst_63 [2] : vector<1x8x8xf32> to vector<1x8xf32>
    %183 = vector.shape_cast %182 : vector<1x8xf32> to vector<1x8x1xf32>
    "tpu.trace_start"() <{level = 10 : i32, message = "bnm,bmd->bnd"}> : () -> ()
    %cst_64 = arith.constant dense<0.000000e+00> : vector<1x8x4xf32>
    %184 = tpu.matmul %181, %175, %cst_64 {dimension_numbers = #tpu.dot_dimension_numbers<[2], [1], [1], [2], [0, 0, 0, 1, 1, 2], [0], [0]>} : vector<1x8x8xf32>, vector<1x8x4xf32>, vector<1x8x4xf32> -> vector<1x8x4xf32>
    "tpu.trace_stop"() : () -> ()
    %185 = tpu.reciprocal %183 : vector<1x8x1xf32> -> vector<1x8x1xf32>
    %186 = vector.broadcast %185 : vector<1x8x1xf32> to vector<1x8x4xf32>
    %187 = arith.mulf %184, %186 : vector<1x8x4xf32>
    %188 = vector.shape_cast %187 : vector<1x8x4xf32> to vector<8x4xf32>
    %c0_65 = arith.constant 0 : index
    %c28 = arith.constant 28 : index
    %189 = vector.load %arg13[%c0_65, %c28] : memref<8x32xf32, #tpu.memory_space<vmem>>, vector<8x4xf32>
    tpu.vector_store %arg13[%c0_65, %c28], %188 {strides = array<i32>} : memref<8x32xf32, #tpu.memory_space<vmem>>, vector<8x4xf32>,
    %c0_66 = arith.constant 0 : index
    %c0_67 = arith.constant 0 : index
    %190 = vector.load %arg13[%c0_66, %c0_67] : memref<8x32xf32, #tpu.memory_space<vmem>>, vector<8x32xf32>
    %c0_68 = arith.constant 0 : index
    %c0_69 = arith.constant 0 : index
    %191 = vector.load %arg10[%c0_68, %c0_69] : memref<32x32xf32, #tpu.memory_space<vmem>>, vector<32x32xf32>
    %cst_70 = arith.constant dense<0.000000e+00> : vector<8x32xf32>
    %192 = tpu.matmul %190, %191, %cst_70 {dimension_numbers = #tpu.dot_dimension_numbers<[1], [0], [0], [1], [0, 0, 1, 1], [], []>} : vector<8x32xf32>, vector<32x32xf32>, vector<8x32xf32> -> vector<8x32xf32>
    %c0_71 = arith.constant 0 : index
    %c0_72 = arith.constant 0 : index
    %193 = vector.load %arg11[%c0_71, %c0_72] : memref<1x32xf32, #tpu.memory_space<vmem>>, vector<1x32xf32>
    %194 = vector.shape_cast %193 : vector<1x32xf32> to vector<32xf32>
    %195 = vector.shape_cast %194 : vector<32xf32> to vector<1x32xf32>
    %196 = vector.broadcast %195 : vector<1x32xf32> to vector<8x32xf32>
    %197 = arith.addf %192, %196 : vector<8x32xf32>
    %198 = vector.shape_cast %197 : vector<8x32xf32> to vector<1x8x32xf32>
    %c0_73 = arith.constant 0 : index
    %c0_74 = arith.constant 0 : index
    %c0_75 = arith.constant 0 : index
    %199 = vector.load %arg12[%c0_73, %c0_74, %c0_75] : memref<1x8x32xf32, #tpu.memory_space<vmem>>, vector<1x8x32xf32>
    tpu.vector_store %arg12[%c0_73, %c0_74, %c0_75], %198 {strides = array<i32>} : memref<1x8x32xf32, #tpu.memory_space<vmem>>, vector<1x8x32xf32>,
    return
  }
  func.func @transform_0(%arg0: i32) -> (i32, i32, i32) {
    %c0_i32 = arith.constant 0 : i32
    %c0_i32_0 = arith.constant 0 : i32
    %c0_i32_1 = arith.constant 0 : i32
    return %arg0, %c0_i32, %c0_i32_0 : i32, i32, i32
  }
  func.func @transform_1(%arg0: i32) -> (i32, i32) {
    %c0_i32 = arith.constant 0 : i32
    %c0_i32_0 = arith.constant 0 : i32
    %c0_i32_1 = arith.constant 0 : i32
    return %c0_i32, %c0_i32_0 : i32, i32
  }
  func.func @transform_2(%arg0: i32) -> (i32, i32) {
    %c0_i32 = arith.constant 0 : i32
    %c0_i32_0 = arith.constant 0 : i32
    %c0_i32_1 = arith.constant 0 : i32
    return %c0_i32, %c0_i32_0 : i32, i32
  }
  func.func @transform_3(%arg0: i32) -> (i32, i32) {
    %c0_i32 = arith.constant 0 : i32
    %c0_i32_0 = arith.constant 0 : i32
    %c0_i32_1 = arith.constant 0 : i32
    return %c0_i32, %c0_i32_0 : i32, i32
  }
  func.func @transform_4(%arg0: i32) -> (i32, i32) {
    %c0_i32 = arith.constant 0 : i32
    %c0_i32_0 = arith.constant 0 : i32
    %c0_i32_1 = arith.constant 0 : i32
    return %c0_i32, %c0_i32_0 : i32, i32
  }
  func.func @transform_5(%arg0: i32) -> (i32, i32) {
    %c0_i32 = arith.constant 0 : i32
    %c0_i32_0 = arith.constant 0 : i32
    %c0_i32_1 = arith.constant 0 : i32
    return %c0_i32, %c0_i32_0 : i32, i32
  }
  func.func @transform_6(%arg0: i32) -> (i32, i32) {
    %c0_i32 = arith.constant 0 : i32
    %c0_i32_0 = arith.constant 0 : i32
    %c0_i32_1 = arith.constant 0 : i32
    return %c0_i32, %c0_i32_0 : i32, i32
  }
  func.func @transform_7(%arg0: i32) -> (i32, i32) {
    %c0_i32 = arith.constant 0 : i32
    %c0_i32_0 = arith.constant 0 : i32
    %c0_i32_1 = arith.constant 0 : i32
    return %c0_i32, %c0_i32_0 : i32, i32
  }
  func.func @transform_8(%arg0: i32) -> (i32, i32) {
    %c0_i32 = arith.constant 0 : i32
    %c0_i32_0 = arith.constant 0 : i32
    %c0_i32_1 = arith.constant 0 : i32
    return %c0_i32, %c0_i32_0 : i32, i32
  }
  func.func @transform_9(%arg0: i32) -> (i32, i32) {
    %c0_i32 = arith.constant 0 : i32
    %c0_i32_0 = arith.constant 0 : i32
    %c0_i32_1 = arith.constant 0 : i32
    return %c0_i32, %c0_i32_0 : i32, i32
  }
  func.func @transform_10(%arg0: i32) -> (i32, i32) {
    %c0_i32 = arith.constant 0 : i32
    %c0_i32_0 = arith.constant 0 : i32
    %c0_i32_1 = arith.constant 0 : i32
    return %c0_i32, %c0_i32_0 : i32, i32
  }
  func.func @transform_11(%arg0: i32) -> (i32, i32, i32) {
    %c0_i32 = arith.constant 0 : i32
    %c0_i32_0 = arith.constant 0 : i32
    %c0_i32_1 = arith.constant 0 : i32
    return %arg0, %c0_i32, %c0_i32_0 : i32, i32, i32
  }
}

</mosaic_0001>

<bundles_post_ra>
// kernel: tpu_custom_call.1
= control target key start
LH: loop header
LB: loop body
LE: loop exit
PB: predicated region body
PF: predicated region fallthrough
CT: control target
= control target key end

     0   :  { %s2262_s0 = inlined_call_operand.hbm [shape: f32[2,8,32], index: 0, kind: input, shape index: {}]   ;;  %s2263_s1 = inlined_call_operand.hbm [shape: f32[1,32], index: 1, kind: input, shape index: {}]   ;;  %s2264_s2 = inlined_call_operand.vmem [shape: f32[1,32], index: 2, kind: input, shape index: {}]   ;;  %s2265_s3 = inlined_call_operand.hbm [shape: f32[32,32], index: 3, kind: input, shape index: {}]   ;;  %s2266_s4 = inlined_call_operand.vmem [shape: f32[1,32], index: 4, kind: input, shape index: {}]   ;;  %s2267_s5 = inlined_call_operand.hbm [shape: f32[32,32], index: 5, kind: input, shape index: {}]   ;;  %s2268_s6 = inlined_call_operand.vmem [shape: f32[1,32], index: 6, kind: input, shape index: {}]   ;;  %s2269_s7 = inlined_call_operand.hbm [shape: f32[32,32], index: 7, kind: input, shape index: {}]   ;;  %s2270_s8 = inlined_call_operand.vmem [shape: f32[1,32], index: 8, kind: input, shape index: {}]   ;;  %s2271_s9 = inlined_call_operand.hbm [shape: f32[32,32], index: 9, kind: input, shape index: {}]   ;;  %s2272_s10 = inlined_call_operand.vmem [shape: f32[1,32], index: 10, kind: input, shape index: {}]   ;;  %s2273_s11 = inlined_call_operand.hbm [shape: f32[2,8,32], index: 11, kind: output, shape index: {}]  }
   0x1   :  { %2274 = sst [smem:[#allocation20_spill]] %s2263_s1 }
   0x2   :  { %2275 = sst [smem:[#allocation21_spill]] %s2265_s3 }
   0x3   :  { %2276 = sst [smem:[#allocation22_spill]] %s2267_s5 }
   0x4   :  { %2277 = sst [smem:[#allocation23_spill]] %s2269_s7 }
   0x5   :  { %2278 = sst [smem:[#allocation24_spill]] %s2271_s9 }
   0x6   :  { %16 = vsyncpa [#allocation4], 0 }
   0x7   :  { %18 = vsyncpa [#allocation4 + $0x1], 0 }
   0x8   :  { %19 = vsyncpa [#allocation7], 0 }
   0x9   :  { %20 = vsyncpa [#allocation10], 0 }
   0xa   :  { %21 = vsyncpa [#allocation13], 0 }
   0xb   :  { %22 = vsyncpa [#allocation5], 0 }
   0xc   :  { %24 = vsyncpa [#allocation5 + $0x1], 0  ;;  %s1993_s17 = smov 0   ;;  %s1995_s18 = smov 0  }
   0xd   :  { %s1997_s19 = smov 0   ;;  %s1999_s20 = smov 0  }
   0xe LB: > { %s2279_s1 = sld [smem:[#allocation20_spill]]  ;;  %s2017_s24 = sadd.s32 4294967295, %s1909_s20   ;;  %s1909_s20 = sphi %s1999_s20, %s2294_s20   ;;  %s1905_s19 = sphi %s1997_s19, %s2293_s19   ;;  %s1901_s18 = sphi %s1995_s18, %s2292_s18   ;;  %s1897_s17 = sphi %s1993_s17, %s2291_s17  }
   0xf   : > { %p1446_p0 = scmp.ge.s32.totalorder %s1909_s20, 1  ;;  %p51_p1 = scmp.eq.s32.totalorder %s2017_s24, 0 }
  0x10   : > { %p297_p2 = scmp.lt.s32.totalorder %s1909_s20, 3  ;;  %s1911_s26 = smov [#allocation6]  }
  0x11   : > { %s311_s27 = sshll.u32 %s1911_s26, 4  ;;  %s2281_s5 = sld [smem:[#allocation22_spill]]  ;;  %s312_s27 = int_to_ptr.vmem [resolvable:$true] %s311_s27 }
  0x12   : > { %p2022_p3 = pnand %p1446_p0, %p297_p2  ;;  %s2283_s3 = sld [smem:[#allocation21_spill]] }
  0x13   : > { %s1912_s16 = smov [#allocation9]   ;;  %s1913_s22 = smov 128  }
  0x14   : > { %s309_s23 = sshll.u32 %s2279_s1, 4  ;;  %p1519_p5 = pneg %p2022_p3  ;;  %s310_s23 = int_to_ptr.hbm [resolvable:$true] %s309_s23 }
  0x15   : > { %s342_s21 = sshll.u32 %s1912_s16, 4  ;;  %s1914_s26 = smov 8   ;;  %s343_s21 = int_to_ptr.vmem [resolvable:$true] %s342_s21 }
  0x16   : > { %p2034_p6 = pnand %p1519_p5, %p51_p1  ;;  %s2284_s7 = sld [smem:[#allocation23_spill]] }
  0x17   : > { %s340_s30 = sshll.u32 %s2281_s5, 4  ;;  %s1915_s5 = smov [#allocation8]   ;;  %s341_s30 = int_to_ptr.hbm [resolvable:$true] %s340_s30 }
  0x18   : > { %s323_s15 = sshll.u32 %s2283_s3, 4  ;;  %s325_s13 = sshll.u32 %s1915_s5, 4  ;;  %s324_s15 = int_to_ptr.hbm [resolvable:$true] %s323_s15  ;;  %s326_s13 = int_to_ptr.vmem [resolvable:$true] %s325_s13 }
  0x19   : > { %1522 = dma.hbm_to_vmem [thread:$0]  (!%p2034_p6), %s310_s23, 16, %s312_s27, [#allocation7]  }
  0x1a   : > { %1528 = dma.hbm_to_vmem [thread:$0]  (!%p2034_p6), %s341_s30, 512, %s343_s21, [#allocation10], %s1913_s22, %s1913_s22, %s1914_s26  }
  0x1b   : > { %1525 = dma.hbm_to_vmem [thread:$0]  (!%p2034_p6), %s324_s15, 512, %s326_s13, [#allocation7], %s1913_s22, %s1913_s22, %s1914_s26  }
  0x1c   : > { %s357_s1 = sshll.u32 %s2284_s7, 4  ;;  %s1916_s23 = smov [#allocation11]   ;;  %s358_s1 = int_to_ptr.hbm [resolvable:$true] %s357_s1 }
  0x1d   : > { %s359_s27 = sshll.u32 %s1916_s23, 4  ;;  %s2285_s9 = sld [smem:[#allocation24_spill]]  ;;  %s360_s27 = int_to_ptr.vmem [resolvable:$true] %s359_s27 }
  0x1e   : > { %1531 = dma.hbm_to_vmem [thread:$0]  (!%p2034_p6), %s358_s1, 512, %s360_s27, [#allocation10], %s1913_s22, %s1913_s22, %s1914_s26  }
  0x1f   : > { %s1917_s5 = smov [#allocation12]   ;;  %s1445_s15 = sadd.s32 4294967294, %s1909_s20  }
  0x20   : > { %s376_s21 = sshll.u32 %s1917_s5, 4  ;;  %s2059_s28 = sadd.s32 1, %s1909_s20   ;;  %s377_s21 = int_to_ptr.vmem [resolvable:$true] %s376_s21 }
  0x21   : > { %s37_s29 = sadd.s32 1, %s1905_s19  ;;  %s34_s13 = ssub.s32 %s1909_s20, %s2059_s28 }
  0x22   : > { %p44_p7 = scmp.ne.s32.totalorder %s1905_s19, %s1901_s18  ;;  %p35_p8 = scmp.eq.s32.totalorder %s34_s13, 0 }
  0x23   : > { %s374_s16 = sshll.u32 %s2285_s9, 4  ;;  %p45_p9 = scmp.eq.s32.totalorder %s1909_s20, 0  ;;  %s375_s16 = int_to_ptr.hbm [resolvable:$true] %s374_s16 }
  0x24   : > { %1534 = dma.hbm_to_vmem [thread:$0]  (!%p2034_p6), %s375_s16, 512, %s377_s21, [#allocation13], %s1913_s22, %s1913_s22, %s1914_s26  }
  0x25   : > { %p50_p10 = scmp.ne.s32.totalorder %s1901_s18, %s1897_s17  ;;  %p284_p11 = scmp.eq.s32.totalorder %s2017_s24, 1 }
  0x26   : > { %s2071_s1 = scalar_select %p35_p8, %s1905_s19, %s37_s29  }
  0x27   : > { %p2075_p12 = por %p51_p1, %p50_p10  ;;  %p2079_p13 = por %p284_p11, %p44_p7 }
  0x28   : > { %p290_p0 = scmp.eq.s32.totalorder %s1445_s15, 1  ;;  %p46_p2 = por %p45_p9, %p44_p7 }
  0x29   : > { %s393_s26 = sand.u32 1, %s1905_s19   ;;  %p1548_p6 = scmp.lt.s32.totalorder %s1909_s20, 2 }
  0x2a   : > { %p2084_p5 = por %p290_p0, %p50_p10  ;;  %s1453_s27 = sshll.u32 %s393_s26, 3 }
  0x2b   : > { %s1454_s30 = sshll.u32 %s1909_s20, 3  ;;  %s397_s29 = scalar_lea.vmem [#allocation3], %s1453_s27 }
  0x2c   : > { %s401_s5 = scalar_lea.hbm %s2262_s0, %s1454_s30  ;;  %s405_s13 = sshll.u32 %s397_s29, 4  ;;  %s406_s13 = int_to_ptr.vmem [resolvable:$true] %s405_s13 }
  0x2d   : > { %s403_s21 = sshll.u32 %s401_s5, 4  ;;  %p2093_p8 = pnand %p1548_p6, %p46_p2  ;;  %s404_s21 = int_to_ptr.hbm [resolvable:$true] %s403_s21 }
  0x2e   : > { %s394_s3 = scalar_lea.sflag [#allocation4], %s393_s26  ;;  %s1801_s7 = sshra.s32 %s404_s21, 4  ;;  %s1802_s7 = int_to_ptr.hbm [resolvable:$true] %s1801_s7 }
  0x2f   : > { %s1803_s9 = scalar_lea.hbm %s1802_s7, 8  ;;  %p1805_p9 = pneg %p2093_p8 }
  0x30   : > { %p1804_p7 = scmp.ne.s32.totalorder %s1802_s7, %s1803_s9  ;;  %s1808_s27 = scalar_lea.hbm %s2262_s0, 16 }
  0x31   : > { %p1809_p0 = scmp.lt.s32.totalorder %s1802_s7, %s2262_s0  ;;  %p1810_p2 = scmp.lt.s32.totalorder %s1808_s27, %s1803_s9 }
  0x32   : > { %p1806_p10 = pnand %p1805_p9, %p1804_p7 }
  0x33   : > { %p1811_p6 = por %p1810_p2, %p1809_p0 }
  0x34   : > { %p1807_p11 = pneg %p1806_p10 }
  0x36   : > { %p1812_p4 = pnand %p1811_p6, %p1807_p11 }
  0x38   : > { %1815 = shalt.err (!%p1812_p4)
}
  0x39   : > { %1538 = dma.hbm_to_vmem [thread:$0]  (!%p2093_p8), %s404_s21, 128, %s406_s13, %s394_s3  }
  0x3a   : > { %414 = sbr.rel (%p2022_p3) target bundleno = 1275 (0x4fb), region = 64  ;;  %s2110_s26 = sand.u32 (!%p2022_p3), 1, %s1901_s18  }
  0x3b   : > { %s1456_s29 = sshll.u32 (!%p2022_p3), %s2110_s26, 3  ;;  %s417_s30 = scalar_lea.sflag (!%p2022_p3), [#allocation4], %s2110_s26 }
  0x3c   : > { %s420_s7 = scalar_lea.vmem (!%p2022_p3), [#allocation3], %s1456_s29 }
  0x3f   : > { %1876 = dma.done.wait (%p2075_p12), %s417_s30, 128  }
  0x40   : > { %1878 = vsyncadd (%p2075_p12), %s417_s30, 4294967168 }
  0x41   : > { %1880 = dma.done.wait (%p51_p1), [#allocation7], 528  }
  0x42   : > { %1882 = vsyncadd (%p51_p1), [#allocation7], 4294966768 }
  0x43   : > { %1884 = dma.done.wait (%p51_p1), [#allocation10], 1024  }
  0x44   : > { %1886 = vsyncadd (%p51_p1), [#allocation10], 4294966272 }
  0x45   : > { %1888 = dma.done.wait (%p51_p1), [#allocation13], 512  }
  0x46   : > { %1890 = vsyncadd (%p51_p1), [#allocation13], 4294966784  ;;  %vm486_vm0 = vcmask 261120   ;;  %v485_v0 = vld [vmem:[%s420_s7] sm:$0xff]  ;;  %v1918_v2 = vmov 32.0   ;;  %v526_v23 = vld [vmem:[#allocation8] sm:$0xff] }
  0x47   : > { %v487_v1 = vsel %vm486_vm0, %v485_v0, 0.0  ;;  %1615 = vrcp.f32 %v1918_v2  ;;  %v529_v14 = vld [vmem:[#allocation8 + $0x18] sm:$0xff]  ;;  %v528_v17 = vld [vmem:[#allocation8 + $0x10] sm:$0xff]  ;;  %v527_v20 = vld [vmem:[#allocation8 + $0x8] sm:$0xff]  ;;  %vm613_vm5 = vcmask 31744   ;;  %s1919_s15 = smov 112  }
  0x48   : > { %488 = vadd.xlane.f32.xlu0 %v487_v1  ;;  %v560_v15 = vld [vmem:[#allocation9 + $0x18] sm:$0xff]  ;;  %549 = vmatpush.msra.mxu0 %v529_v14  ;;  %v559_v18 = vld [vmem:[#allocation9 + $0x10] sm:$0xff]  ;;  %v558_v21 = vld [vmem:[#allocation9 + $0x8] sm:$0xff]  ;;  %s1920_s14 = smov 124   ;;  %s1921_s27 = smov 120   ;;  %vm640_vm6 = vcmask 64512  }
  0x49   : > { %v588_v16 = vld [vmem:[#allocation11 + $0x18] sm:$0xff]  ;;  %577 = vmatpush.msra.mxu1 %v560_v15  ;;  %v587_v19 = vld [vmem:[#allocation11 + $0x10] sm:$0xff]  ;;  %v586_v22 = vld [vmem:[#allocation11 + $0x8] sm:$0xff]  ;;  %s1922_s30 = smov 108   ;;  %s1923_s7 = smov 116  }
  0x4a   : > { %605 = vmatpush.msra.mxu2 %v588_v16  ;;  %550 = vmatpush.msra.mxu0 %v528_v17  ;;  %v557_v24 = vld [vmem:[#allocation9] sm:$0xff]  ;;  %v1609_v35 = vld [vmem:[#allocation6] ss:$0 sm:$0xff]  ;;  %s1924_s3 = smov 104   ;;  %s1925_s9 = smov 100  }
  0x4b   : > { %578 = vmatpush.msra.mxu1 %v559_v18  ;;  %v585_v25 = vld [vmem:[#allocation11] sm:$0xff]  ;;  %s1926_s25 = smov 4   ;;  %s1927_s12 = smov 8  }
  0x4c   : > { %606 = vmatpush.msra.mxu2 %v587_v19  ;;  %551 = vmatpush.msra.mxu0 %v527_v20  ;;  %v1610_v38 = vld [vmem:[%s2264_s2] ss:$0 sm:$0xff]  ;;  %s1928_s21 = smov 12   ;;  %s1929_s13 = smov 16  }
  0x4d   : > { %v1616_v3 = vpop.eup %1615  ;;  %579 = vmatpush.msra.mxu1 %v558_v21  ;;  %v1612_v41 = vld [vmem:[%s2268_s6] ss:$0 sm:$0xff]  ;;  %s1492_s16 = sshll.u32 %s2017_s24, 3  ;;  %s1312_s24 = scalar_lea.sflag [#allocation5], %s2110_s26 }
  0x4e   : > { %v491_v4 = vmul.f32 32.0, %v1616_v3  ;;  %vm495_vm1 = vweird.f32 %v1616_v3  ;;  %607 = vmatpush.msra.mxu2 %v586_v22  ;;  %552 = vmatpush.msra.mxu0 %v526_v23  ;;  %v1611_v43 = vld [vmem:[%s2266_s4] ss:$0 sm:$0xff] }
  0x4f   : > { %580 = vmatpush.msra.mxu1 %v557_v24  ;;  %v1613_v46 = vld [vmem:[%s2270_s8] ss:$0 sm:$0xff] }
  0x50   : > { %v492_v5 = vsub.f32 1.0, %v491_v4  ;;  %608 = vmatpush.msra.mxu2 %v585_v25 }
  0x52   : > { %v493_v6 = vmul.f32 %v1616_v3, %v492_v5 }
  0x54   : > { %v494_v7 = vadd.f32 %v1616_v3, %v493_v6 }
  0x56   : > { %v496_v8 = vsel %vm495_vm1, %v1616_v3, %v494_v7 }
  0xbb   : > { %v489_v9 = vpop.xlane.xlu0 %488 }
  0xbc   : > { %v497_v10 = vmul.f32 %v496_v8, %v489_v9 }
  0xbe   : > { %v498_v11 = vsub.f32 %v485_v0, %v497_v10 }
  0xc0   : > { %v499_v12 = vmul.f32 %v498_v11, %v498_v11 }
  0xc2   : > { %v500_v13 = vsel %vm486_vm0, %v499_v12, 0.0 }
  0xc3   : > { %501 = vadd.xlane.f32.xlu0 %v500_v13 }
 0x136   : > { %v502_v26 = vpop.xlane.xlu0 %501 }
 0x137   : > { %v503_v27 = vmul.f32 %v502_v26, %v496_v8 }
 0x139   : > { %v504_v28 = vadd.f32 1e-05, %v503_v27 }
 0x13b   : > { %1617 = vrsqrt.f32 %v504_v28  ;;  %vm511_vm3 = vweird.f32 %v504_v28 }
 0x141   : > { %v1618_v29 = vpop.eup %1617 }
 0x142   : > { %v506_v30 = vmul.f32 %v1618_v29, %v504_v28  ;;  %vm512_vm2 = vweird.f32 %v1618_v29 }
 0x143   : > { %vm513_vm4 = vmor %vm511_vm3, %vm512_vm2 }
 0x144   : > { %v507_v31 = vmul.f32 %v1618_v29, %v506_v30 }
 0x146   : > { %v508_v32 = vmul.f32 0.5, %v507_v31 }
 0x148   : > { %v509_v33 = vsub.f32 1.5, %v508_v32 }
 0x14a   : > { %v510_v34 = vmul.f32 %v1618_v29, %v509_v33 }
 0x14c   : > { %v514_v36 = vsel %vm513_vm4, %v1618_v29, %v510_v34 }
 0x14d   : > { %v515_v37 = vmul.f32 %v514_v36, %v498_v11 }
 0x14f   : > { %v520_v39 = vmul.f32 %v1609_v35, %v515_v37 }
 0x151   : > { %v525_v40 = vadd.f32 %v1610_v38, %v520_v39 }
 0x153   : > { %1463 = vmatmul.msk.f32.vlgmr.msra.gmra.mxu0 %vm486_vm0, %v525_v40  ;;  %1464 = vmatmul.msk.f32.vlgmr.msra.gmra.mxu1 %vm486_vm0, %v525_v40 }
 0x154   : > { %1465 = vmatmul.msk.f32.vlgmr.msra.gmra.mxu2 %vm486_vm0, %v525_v40 }
 0x1d0   : > { %v582_v42 = vpop.f32.mrf.mxu1  ;;  %v554_v45 = vpop.f32.mrf.mxu0 }
 0x1d1   : > { %v583_v44 = vadd.f32 %v1612_v41, %v582_v42  ;;  %v555_v47 = vadd.f32 %v1611_v43, %v554_v45 }
 0x1d3   : > { %944 = vrot.lane.b32.xlu0 %v583_v44, %s1919_s15  ;;  %691 = vrot.lane.b32.xlu2 %v583_v44, %s1920_s14 }
 0x1d4   : > { %776 = vrot.lane.b32.xlu1 %v583_v44, %s1921_s27  ;;  %1466 = vmatpush.xpose.msk.msra.mxu3 %vm613_vm5, %v583_v44 }
 0x1d7   : > { %v610_v48 = vpop.f32.mrf.mxu2  ;;  %1467 = vmatmul.msk.f32.vlgmr.msra.gmra.mxu3 %vm613_vm5, %v555_v47 }
 0x1d8   : > { %v2154_v49 = vadd.f32 %v1613_v46, %v610_v48 }
 0x1da   : > { %668 = vmatpush.msrb.mxu3 %v2154_v49 }
 0x1db   : > { %1026 = vrot.lane.b32.xlu0 %v555_v47, %s1922_s30  ;;  %689 = vrot.lane.b32.xlu2 %v555_v47, %s1920_s14 }
 0x1dc   : > { %774 = vrot.lane.b32.xlu1 %v555_v47, %s1921_s27 }
 0x1e3   : > { %860 = vrot.lane.b32.xlu2 %v583_v44, %s1923_s7 }
 0x1e4   : > { %942 = vrot.lane.b32.xlu1 %v555_v47, %s1919_s15 }
 0x1eb   : > { %1112 = vrot.lane.b32.xlu2 %v583_v44, %s1924_s3 }
 0x1ec   : > { %858 = vrot.lane.b32.xlu1 %v555_v47, %s1923_s7 }
 0x1f3   : > { %1028 = vrot.lane.b32.xlu2 %v583_v44, %s1922_s30 }
 0x1f4   : > { %1110 = vrot.lane.b32.xlu1 %v555_v47, %s1924_s3 }
 0x1fb   : > { %1194 = vrot.lane.b32.xlu2 %v555_v47, %s1925_s9 }
 0x1fc   : > { %1196 = vrot.lane.b32.xlu1 %v583_v44, %s1925_s9 }
 0x203   : > { %895 = vrot.lane.b32.xlu2 %v2154_v49, %s1923_s7  ;;  %s1322_s7 = scalar_lea.hbm %s2273_s11, %s1492_s16 }
 0x22d   : > { %v692_v50 = vpop.permute.xlu2 %691 }
 0x22e   : > { %1469 = vmatpush.xpose.msk.msrb.mxu0 %vm613_vm5, %v692_v50 }
 0x235   : > { %v690_v51 = vpop.permute.xlu2 %689 }
 0x236   : > { %1470 = vmatmul.msk.f32.vlgmr.msrb.gmra.mxu0 %vm613_vm5, %v690_v51 }
 0x23d   : > { %v861_v52 = vpop.permute.xlu2 %860 }
 0x23e   : > { %1475 = vmatpush.xpose.msk.msra.mxu0 %vm613_vm5, %v861_v52 }
 0x245   : > { %v945_v53 = vpop.permute.xlu0 %944  ;;  %v1113_v54 = vpop.permute.xlu2 %1112 }
 0x246   : > { %v777_v55 = vpop.permute.xlu1 %776 }
 0x247   : > { %1472 = vmatpush.xpose.msk.msrb.mxu2 %vm613_vm5, %v777_v55 }
 0x24b   : > { %1478 = vmatpush.xpose.msk.msra.mxu2 %vm613_vm5, %v945_v53 }
 0x24d   : > { %v1029_v56 = vpop.permute.xlu2 %1028  ;;  %v1027_v62 = vpop.permute.xlu0 %1026 }
 0x24e   : > { %v775_v57 = vpop.permute.xlu1 %774  ;;  %1481 = vmatpush.xpose.msk.msrb.mxu0 %vm613_vm5, %v1029_v56 }
 0x24f   : > { %1473 = vmatmul.msk.f32.vlgmr.msrb.gmra.mxu2 %vm613_vm5, %v775_v57 }
 0x250   : > { %1484 = vmatpush.xpose.msk.msrb.mxu2 %vm613_vm5, %v1113_v54 }
 0x255   : > { %v1195_v1 = vpop.permute.xlu2 %1194 }
 0x256   : > { %v943_v58 = vpop.permute.xlu1 %942 }
 0x257   : > { %1479 = vmatmul.msk.f32.vlgmr.msra.gmra.mxu2 %vm613_vm5, %v943_v58 }
 0x25a   : > { %v637_v59 = vpop.f32.mrf.mxu3 }
 0x25b   : > { %v641_v60 = vsel %vm640_vm6, %v637_v59, -inf }
 0x25c   : > { %642 = vmax.xlane.f32.xlu0 %v641_v60 }
 0x25d   : > { %v896_v27 = vpop.permute.xlu2 %895 }
 0x25e   : > { %v859_v61 = vpop.permute.xlu1 %858 }
 0x25f   : > { %1476 = vmatmul.msk.f32.vlgmr.msra.gmra.mxu0 %vm613_vm5, %v859_v61 }
 0x266   : > { %v1111_v63 = vpop.permute.xlu1 %1110 }
 0x267   : > { %1482 = vmatmul.msk.f32.vlgmr.msrb.gmra.mxu0 %vm613_vm5, %v1027_v62  ;;  %1485 = vmatmul.msk.f32.vlgmr.msrb.gmra.mxu2 %vm613_vm5, %v1111_v63 }
 0x26e   : > { %v1197_v0 = vpop.permute.xlu1 %1196 }
 0x26f   : > { %1487 = vmatpush.xpose.msk.msra.mxu0 %vm613_vm5, %v1197_v0 }
 0x270   : > { %811 = vrot.lane.b32.xlu0 %v2154_v49, %s1921_s27  ;;  %s1932_s27 = smov 28  }
 0x272   : > { %1488 = vmatmul.msk.f32.vlgmr.msra.gmra.mxu0 %vm613_vm5, %v1195_v1 }
 0x278   : > { %979 = vrot.lane.b32.xlu0 %v2154_v49, %s1919_s15  ;;  %s1930_s15 = smov 20  }
 0x2b3   : > { %v714_v2 = vpop.f32.mrf.mxu0 }
 0x2b4   : > { %v717_v3 = vsel %vm640_vm6, %v714_v2, -inf }
 0x2b5   : > { %718 = vmax.xlane.f32.xlu1 %v717_v3 }
 0x2ce   : > { %727 = vrot.lane.b32.xlu1 %v2154_v49, %s1920_s14  ;;  %s1931_s14 = smov 24  }
 0x2cf   : > { %v643_v4 = vpop.xlane.xlu0 %642 }
 0x2d0   : > { %v644_v5 = vsub.f32 %v637_v59, %v643_v4 }
 0x2d2   : > { %v645_v6 = vmul.f32 1.442695, %v644_v5  ;;  %v799_v7 = vpop.f32.mrf.mxu2 }
 0x2d3   : > { %v802_v8 = vsel %vm640_vm6, %v799_v7, -inf }
 0x2d4   : > { %1619 = vpow2.f32 %v645_v6  ;;  %803 = vmax.xlane.f32.xlu2 %v802_v8 }
 0x2da   : > { %v1620_v9 = vpop.eup %1619  ;;  %v967_v10 = vpop.f32.mrf.mxu2 }
 0x2db   : > { %1468 = vmatmul.msk.f32.vlgmr.msrb.gmra.mxu3 %vm640_vm6, %v1620_v9  ;;  %v970_v11 = vsel %vm640_vm6, %v967_v10, -inf  ;;  %v647_v43 = vsel %vm640_vm6, %v1620_v9, 0.0 }
 0x2dc   : > { %971 = vmax.xlane.f32.xlu2 %v970_v11  ;;  %v883_v12 = vpop.f32.mrf.mxu0 }
 0x2dd   : > { %v886_v13 = vsel %vm640_vm6, %v883_v12, -inf }
 0x2de   : > { %887 = vmax.xlane.f32.xlu0 %v886_v13 }
 0x2e2   : > { %v812_v14 = vpop.permute.xlu0 %811 }
 0x2e3   : > { %832 = vmatpush.msra.mxu3 %v812_v14 }
 0x2e4   : > { %v1051_v15 = vpop.f32.mrf.mxu0 }
 0x2e5   : > { %v1054_v16 = vsel %vm640_vm6, %v1051_v15, -inf }
 0x2e6   : > { %1055 = vmax.xlane.f32.xlu2 %v1054_v16 }
 0x2ea   : > { %v1135_v17 = vpop.f32.mrf.mxu2  ;;  %v980_v18 = vpop.permute.xlu0 %979 }
 0x2eb   : > { %1000 = vmatpush.msrb.mxu3 %v980_v18  ;;  %v1138_v19 = vsel %vm640_vm6, %v1135_v17, -inf }
 0x2ee   : > { %1139 = vmax.xlane.f32.xlu2 %v1138_v19 }
 0x2ef   : > { %v2197_v20 = vpop.f32.mrf.mxu0 }
 0x2f0   : > { %v1222_v21 = vsel %vm640_vm6, %v2197_v20, -inf }
 0x2f2   : > { %1063 = vrot.lane.b32.xlu0 %v2154_v49, %s1922_s30 }
 0x2f8   : > { %1223 = vmax.xlane.f32.xlu1 %v1222_v21 }
 0x2fa   : > { %1147 = vrot.lane.b32.xlu0 %v2154_v49, %s1924_s3 }
 0x306   : > { %1231 = vrot.lane.b32.xlu2 %v2154_v49, %s1925_s9 }
 0x328   : > { %v719_v22 = vpop.xlane.xlu1 %718 }
 0x329   : > { %v720_v23 = vsub.f32 %v714_v2, %v719_v22 }
 0x32b   : > { %v721_v24 = vmul.f32 1.442695, %v720_v23 }
 0x32d   : > { %1621 = vpow2.f32 %v721_v24 }
 0x333   : > { %v1622_v25 = vpop.eup %1621 }
 0x334   : > { %v723_v26 = vsel %vm640_vm6, %v1622_v25, 0.0 }
 0x335   : > { %724 = vadd.xlane.f32.xlu0 %v723_v26 }
 0x340   : > { %v728_v28 = vpop.permute.xlu1 %727 }
 0x341   : > { %748 = vmatpush.msrb.mxu1 %v728_v28 }
 0x342   : > { %1471 = vmatmul.msk.f32.vlgmr.msrb.gmra.mxu1 %vm640_vm6, %v1622_v25 }
 0x343   : > { %916 = vmatpush.msra.mxu1 %v896_v27 }
 0x347   : > { %v804_v29 = vpop.xlane.xlu2 %803 }
 0x348   : > { %v805_v30 = vsub.f32 %v799_v7, %v804_v29 }
 0x34a   : > { %v806_v31 = vmul.f32 1.442695, %v805_v30 }
 0x34c   : > { %1623 = vpow2.f32 %v806_v31 }
 0x34f   : > { %v972_v32 = vpop.xlane.xlu2 %971 }
 0x350   : > { %v973_v33 = vsub.f32 %v967_v10, %v972_v32 }
 0x351   : > { %v888_v34 = vpop.xlane.xlu0 %887 }
 0x352   : > { %v1624_v35 = vpop.eup %1623  ;;  %v974_v36 = vmul.f32 1.442695, %v973_v33  ;;  %v889_v37 = vsub.f32 %v883_v12, %v888_v34 }
 0x353   : > { %1474 = vmatmul.msk.f32.vlgmr.msra.gmra.mxu3 %vm640_vm6, %v1624_v35  ;;  %v808_v38 = vsel %vm640_vm6, %v1624_v35, 0.0 }
 0x354   : > { %1625 = vpow2.f32 %v974_v36  ;;  %v890_v39 = vmul.f32 1.442695, %v889_v37  ;;  %809 = vadd.xlane.f32.xlu2 %v808_v38 }
 0x356   : > { %1627 = vpow2.f32 %v890_v39 }
 0x359   : > { %v1056_v40 = vpop.xlane.xlu2 %1055 }
 0x35a   : > { %v1626_v41 = vpop.eup %1625  ;;  %v1057_v42 = vsub.f32 %v1051_v15, %v1056_v40 }
 0x35b   : > { %1480 = vmatmul.msk.f32.vlgmr.msrb.gmra.mxu3 %vm640_vm6, %v1626_v41  ;;  %v976_v52 = vsel %vm640_vm6, %v1626_v41, 0.0 }
 0x35c   : > { %v1628_v44 = vpop.eup %1627  ;;  %v1058_v45 = vmul.f32 1.442695, %v1057_v42  ;;  %648 = vadd.xlane.f32.xlu2 %v647_v43 }
 0x35d   : > { %1477 = vmatmul.msk.f32.vlgmr.msra.gmra.mxu1 %vm640_vm6, %v1628_v44  ;;  %v892_v46 = vsel %vm640_vm6, %v1628_v44, 0.0 }
 0x35e   : > { %1629 = vpow2.f32 %v1058_v45  ;;  %893 = vadd.xlane.f32.xlu1 %v892_v46  ;;  %v670_v16 = vpop.f32.mrf.mxu3 }
 0x361   : > { %v1140_v47 = vpop.xlane.xlu2 %1139 }
 0x362   : > { %v1141_v48 = vsub.f32 %v1135_v17, %v1140_v47 }
 0x364   : > { %v1630_v49 = vpop.eup %1629  ;;  %v1142_v50 = vmul.f32 1.442695, %v1141_v48  ;;  %v1064_v51 = vpop.permute.xlu0 %1063 }
 0x365   : > { %1084 = vmatpush.msrb.mxu1 %v1064_v51  ;;  %v1060_v59 = vsel %vm640_vm6, %v1630_v49, 0.0 }
 0x366   : > { %1631 = vpow2.f32 %v1142_v50  ;;  %977 = vadd.xlane.f32.xlu1 %v976_v52  ;;  %1483 = vmatmul.msk.f32.vlgmr.msrb.gmra.mxu1 %vm640_vm6, %v1630_v49 }
 0x369   : > { %v1232_v53 = vpop.permute.xlu2 %1231 }
 0x36a   : > { %1252 = vmatpush.msra.mxu1 %v1232_v53 }
 0x36b   : > { %v1224_v54 = vpop.xlane.xlu1 %1223 }
 0x36c   : > { %v1632_v55 = vpop.eup %1631  ;;  %v1225_v56 = vsub.f32 %v2197_v20, %v1224_v54  ;;  %v1148_v57 = vpop.permute.xlu0 %1147 }
 0x36d   : > { %1168 = vmatpush.msra.mxu3 %v1148_v57  ;;  %v1144_v58 = vsel %vm640_vm6, %v1632_v55, 0.0 }
 0x36e   : > { %v1226_v60 = vmul.f32 1.442695, %v1225_v56  ;;  %1145 = vadd.xlane.f32.xlu0 %v1144_v58  ;;  %1061 = vadd.xlane.f32.xlu1 %v1060_v59 }
 0x36f   : > { %1486 = vmatmul.msk.f32.vlgmr.msra.gmra.mxu3 %vm640_vm6, %v1632_v55 }
 0x370   : > { %1633 = vpow2.f32 %v1226_v60 }
 0x376   : > { %v1634_v61 = vpop.eup %1633 }
 0x377   : > { %1489 = vmatmul.msk.f32.vlgmr.msra.gmra.mxu1 %vm640_vm6, %v1634_v61  ;;  %v1228_v62 = vsel %vm640_vm6, %v1634_v61, 0.0 }
 0x378   : > { %1229 = vadd.xlane.f32.xlu1 %v1228_v62 }
 0x3a8   : > { %v725_v63 = vpop.xlane.xlu0 %724 }
 0x3a9   : > { %1635 = vrcp.f32 %v725_v63  ;;  %v764_v5 = vand.u32 2147483648, %v725_v63  ;;  %vm758_vm8 = vweird.f32 %v725_v63  ;;  %v762_v6 = vand.u32 2147483647, %v725_v63 }
 0x3ab   : > { %v765_v8 = vor.u32 1.1754944e-38, %v764_v5  ;;  %vm763_vm10 = vcmp.eq.f32.partialorder %v762_v6, 8.507059e+37 }
 0x3af   : > { %v1636_v0 = vpop.eup %1635 }
 0x3b0   : > { %v754_v1 = vmul.f32 %v1636_v0, %v725_v63  ;;  %vm759_vm7 = vweird.f32 %v1636_v0 }
 0x3b1   : > { %vm760_vm9 = vmor %vm758_vm8, %vm759_vm7 }
 0x3b2   : > { %v755_v2 = vsub.f32 1.0, %v754_v1 }
 0x3b4   : > { %v756_v3 = vmul.f32 %v1636_v0, %v755_v2 }
 0x3b6   : > { %v757_v4 = vadd.f32 %v1636_v0, %v756_v3 }
 0x3b8   : > { %v761_v7 = vsel %vm760_vm9, %v1636_v0, %v757_v4 }
 0x3b9   : > { %v766_v10 = vsel %vm763_vm10, %v765_v8, %v761_v7 }
 0x3bf   : > { %v750_v9 = vpop.f32.mrf.mxu1 }
 0x3c0   : > { %v767_v11 = vmul.f32 %v766_v10, %v750_v9 }
 0x3c2   : > { %769 = vrot.lane.b32.xlu0 %v767_v11, %s1926_s25  ;;  %s484_s25 = scalar_lea.vmem [#allocation14], %s1456_s29  ;;  %s1851_s29 = scalar_lea.hbm %s2273_s11, 16 }
 0x3c7   : > { %v810_v12 = vpop.xlane.xlu2 %809 }
 0x3c8   : > { %1637 = vrcp.f32 %v810_v12  ;;  %v848_v19 = vand.u32 2147483648, %v810_v12  ;;  %v846_v21 = vand.u32 2147483647, %v810_v12  ;;  %vm842_vm12 = vweird.f32 %v810_v12 }
 0x3ca   : > { %v849_v24 = vor.u32 1.1754944e-38, %v848_v19  ;;  %vm847_vm14 = vcmp.eq.f32.partialorder %v846_v21, 8.507059e+37 }
 0x3ce   : > { %v1638_v13 = vpop.eup %1637 }
 0x3cf   : > { %v838_v14 = vmul.f32 %v1638_v13, %v810_v12  ;;  %v649_v15 = vpop.xlane.xlu2 %648  ;;  %vm843_vm11 = vweird.f32 %v1638_v13 }
 0x3d0   : > { %1639 = vrcp.f32 %v649_v15  ;;  %vm844_vm13 = vmor %vm842_vm12, %vm843_vm11  ;;  %v684_v34 = vand.u32 2147483648, %v649_v15  ;;  %v682_v36 = vand.u32 2147483647, %v649_v15  ;;  %vm678_vm1 = vweird.f32 %v649_v15 }
 0x3d1   : > { %v839_v17 = vsub.f32 1.0, %v838_v14  ;;  %v894_v18 = vpop.xlane.xlu1 %893 }
 0x3d2   : > { %1641 = vrcp.f32 %v894_v18  ;;  %v932_v38 = vand.u32 2147483648, %v894_v18  ;;  %v930_v41 = vand.u32 2147483647, %v894_v18  ;;  %v685_v42 = vor.u32 1.1754944e-38, %v684_v34 }
 0x3d3   : > { %v840_v20 = vmul.f32 %v1638_v13, %v839_v17  ;;  %vm683_vm4 = vcmp.eq.f32.partialorder %v682_v36, 8.507059e+37  ;;  %vm926_vm6 = vweird.f32 %v894_v18 }
 0x3d4   : > { %v933_v47 = vor.u32 1.1754944e-38, %v932_v38  ;;  %vm931_vm8 = vcmp.eq.f32.partialorder %v930_v41, 8.507059e+37  ;;  %v1281_v41 = vld [vmem:[#allocation12 + $0x10] sm:$0xff] }
 0x3d5   : > { %v841_v22 = vadd.f32 %v1638_v13, %v840_v20 }
 0x3d6   : > { %v1640_v23 = vpop.eup %1639  ;;  %v834_v28 = vpop.f32.mrf.mxu3 }
 0x3d7   : > { %v674_v25 = vmul.f32 %v1640_v23, %v649_v15  ;;  %v845_v26 = vsel %vm844_vm13, %v1638_v13, %v841_v22  ;;  %vm679_vm15 = vweird.f32 %v1640_v23 }
 0x3d8   : > { %v1642_v27 = vpop.eup %1641  ;;  %v850_v29 = vsel %vm847_vm14, %v849_v24, %v845_v26  ;;  %vm680_vm3 = vmor %vm678_vm1, %vm679_vm15 }
 0x3d9   : > { %v675_v30 = vsub.f32 1.0, %v674_v25  ;;  %v922_v31 = vmul.f32 %v1642_v27, %v894_v18  ;;  %v851_v32 = vmul.f32 %v850_v29, %v834_v28  ;;  %v978_v33 = vpop.xlane.xlu1 %977  ;;  %vm927_vm2 = vweird.f32 %v1642_v27 }
 0x3da   : > { %1643 = vrcp.f32 %v978_v33  ;;  %vm928_vm7 = vmor %vm926_vm6, %vm927_vm2  ;;  %v918_v53 = vpop.f32.mrf.mxu1  ;;  %v1016_v57 = vand.u32 2147483648, %v978_v33  ;;  %v1014_v59 = vand.u32 2147483647, %v978_v33  ;;  %vm1010_vm10 = vweird.f32 %v978_v33 }
 0x3db   : > { %v676_v35 = vmul.f32 %v1640_v23, %v675_v30  ;;  %v923_v37 = vsub.f32 1.0, %v922_v31  ;;  %853 = vrot.lane.b32.xlu1 %v851_v32, %s1927_s12  ;;  %s1324_s12 = sshll.u32 %s484_s25, 4  ;;  %s1325_s12 = int_to_ptr.vmem [resolvable:$true] %s1324_s12 }
 0x3dc   : > { %v1017_v62 = vor.u32 1.1754944e-38, %v1016_v57  ;;  %vm1015_vm12 = vcmp.eq.f32.partialorder %v1014_v59, 8.507059e+37 }
 0x3dd   : > { %v677_v39 = vadd.f32 %v1640_v23, %v676_v35  ;;  %v924_v40 = vmul.f32 %v1642_v27, %v923_v37 }
 0x3de   : > { %v1002_v2 = vpop.f32.mrf.mxu3 }
 0x3df   : > { %v681_v43 = vsel %vm680_vm3, %v1640_v23, %v677_v39  ;;  %v925_v44 = vadd.f32 %v1642_v27, %v924_v40  ;;  %v1282_v40 = vld [vmem:[#allocation12 + $0x18] sm:$0xff] }
 0x3e0   : > { %v1644_v45 = vpop.eup %1643  ;;  %v686_v46 = vsel %vm683_vm4, %v685_v42, %v681_v43  ;;  %1302 = vmatpush.msra.mxu2 %v1282_v40  ;;  %v1280_v42 = vld [vmem:[#allocation12 + $0x8] sm:$0xff] }
 0x3e1   : > { %v1006_v48 = vmul.f32 %v1644_v45, %v978_v33  ;;  %v929_v49 = vsel %vm928_vm7, %v1642_v27, %v925_v44  ;;  %v1062_v50 = vpop.xlane.xlu1 %1061  ;;  %v1146_v51 = vpop.xlane.xlu0 %1145  ;;  %v687_v52 = vmul.f32 %v686_v46, %v670_v16  ;;  %vm1011_vm9 = vweird.f32 %v1644_v45 }
 0x3e2   : > { %v934_v54 = vsel %vm931_vm8, %v933_v47, %v929_v49  ;;  %1645 = vrcp.f32 %v1062_v50  ;;  %vm1012_vm11 = vmor %vm1010_vm10, %vm1011_vm9  ;;  %v1100_v9 = vand.u32 2147483648, %v1062_v50  ;;  %v1098_v11 = vand.u32 2147483647, %v1062_v50  ;;  %1303 = vmatpush.msra.mxu2 %v1281_v41 }
 0x3e3   : > { %v1007_v55 = vsub.f32 1.0, %v1006_v48  ;;  %v935_v56 = vmul.f32 %v934_v54, %v918_v53  ;;  %1647 = vrcp.f32 %v1146_v51  ;;  %688 = vst.msk [vmem:[#allocation2] sm:$0xff] %vm613_vm5, %v687_v52  ;;  %v1184_v12 = vand.u32 2147483648, %v1146_v51  ;;  %v1086_v21 = vpop.f32.mrf.mxu1 }
 0x3e4   : > { %v1182_v14 = vand.u32 2147483647, %v1146_v51  ;;  %vm1094_vm14 = vweird.f32 %v1062_v50  ;;  %v1101_v16 = vor.u32 1.1754944e-38, %v1100_v9  ;;  %vm1178_vm1 = vweird.f32 %v1146_v51  ;;  %1304 = vmatpush.msra.mxu2 %v1280_v42 }
 0x3e5   : > { %v1008_v58 = vmul.f32 %v1644_v45, %v1007_v55  ;;  %937 = vrot.lane.b32.xlu2 %v935_v56, %s1928_s21  ;;  %vm1099_vm2 = vcmp.eq.f32.partialorder %v1098_v11, 8.507059e+37  ;;  %v1185_v19 = vor.u32 1.1754944e-38, %v1184_v12  ;;  %vm772_vm10 = vcmask 64544   ;;  %s1326_s21 = sshll.u32 %s1322_s7, 4  ;;  %s1327_s21 = int_to_ptr.hbm [resolvable:$true] %s1326_s21 }
 0x3e6   : > { %vm1183_vm4 = vcmp.eq.f32.partialorder %v1182_v14, 8.507059e+37 }
 0x3e7   : > { %v1009_v60 = vadd.f32 %v1644_v45, %v1008_v58 }
 0x3e8   : > { %v1646_v61 = vpop.eup %1645 }
 0x3e9   : > { %v1648_v63 = vpop.eup %1647  ;;  %v1013_v0 = vsel %vm1012_vm11, %v1644_v45, %v1009_v60  ;;  %v1090_v1 = vmul.f32 %v1646_v61, %v1062_v50  ;;  %vm1095_vm5 = vweird.f32 %v1646_v61  ;;  %vm856_vm11 = vcmask 97344   ;;  %v1279_v45 = vld [vmem:[#allocation12] sm:$0xff] }
 0x3ea   : > { %v1018_v3 = vsel %vm1015_vm12, %v1017_v62, %v1013_v0  ;;  %v1174_v4 = vmul.f32 %v1648_v63, %v1146_v51  ;;  %vm1179_vm13 = vweird.f32 %v1648_v63  ;;  %vm1096_vm15 = vmor %vm1094_vm14, %vm1095_vm5  ;;  %vm940_vm12 = vcmask 130144   ;;  %1305 = vmatpush.msra.mxu2 %v1279_v45  ;;  %v1614_v51 = vld [vmem:[%s2272_s10] ss:$0 sm:$0xff] }
 0x3eb   : > { %v1019_v5 = vmul.f32 %v1018_v3, %v1002_v2  ;;  %v1091_v6 = vsub.f32 1.0, %v1090_v1  ;;  %v1230_v7 = vpop.xlane.xlu1 %1229  ;;  %vm1180_vm3 = vmor %vm1178_vm1, %vm1179_vm13  ;;  %vm1024_vm5 = vcmask 162944   ;;  %vm1108_vm13 = vcmask 195744  }
 0x3ec   : > { %v1175_v8 = vsub.f32 1.0, %v1174_v4  ;;  %1649 = vrcp.f32 %v1230_v7  ;;  %v1268_v30 = vand.u32 2147483648, %v1230_v7  ;;  %v1266_v32 = vand.u32 2147483647, %v1230_v7 }
 0x3ed   : > { %v1092_v10 = vmul.f32 %v1646_v61, %v1091_v6  ;;  %1021 = vrot.lane.b32.xlu0 %v1019_v5, %s1929_s13  ;;  %vm1262_vm7 = vweird.f32 %v1230_v7  ;;  %vm1192_vm14 = vcmask 228544   ;;  %s1845_s13 = sshra.s32 %s1327_s21, 4  ;;  %s1846_s13 = int_to_ptr.hbm [resolvable:$true] %s1845_s13 }
 0x3ee   : > { %v1176_v13 = vmul.f32 %v1648_v63, %v1175_v8  ;;  %v1269_v34 = vor.u32 1.1754944e-38, %v1268_v30  ;;  %vm1267_vm9 = vcmp.eq.f32.partialorder %v1266_v32, 8.507059e+37  ;;  %p1852_p12 = scmp.lt.s32.totalorder %s1846_s13, %s2273_s11 }
 0x3ef   : > { %v1093_v15 = vadd.f32 %v1646_v61, %v1092_v10 }
 0x3f0   : > { %v1177_v17 = vadd.f32 %v1648_v63, %v1176_v13 }
 0x3f1   : > { %v1097_v18 = vsel %vm1096_vm15, %v1646_v61, %v1093_v15  ;;  %vm1276_vm15 = vcmask 261344  }
 0x3f2   : > { %v1650_v20 = vpop.eup %1649  ;;  %v1102_v22 = vsel %vm1099_vm2, %v1101_v16, %v1097_v18  ;;  %v1170_v23 = vpop.f32.mrf.mxu3  ;;  %v1181_v24 = vsel %vm1180_vm3, %v1648_v63, %v1177_v17 }
 0x3f3   : > { %v1103_v25 = vmul.f32 %v1102_v22, %v1086_v21  ;;  %v1258_v26 = vmul.f32 %v1650_v20, %v1230_v7  ;;  %v1186_v27 = vsel %vm1183_vm4, %v1185_v19, %v1181_v24  ;;  %vm1263_vm6 = vweird.f32 %v1650_v20 }
 0x3f4   : > { %v1187_v28 = vmul.f32 %v1186_v27, %v1170_v23  ;;  %vm1264_vm8 = vmor %vm1262_vm7, %vm1263_vm6  ;;  %v1254_v36 = vpop.f32.mrf.mxu1 }
 0x3f5   : > { %v1259_v29 = vsub.f32 1.0, %v1258_v26  ;;  %1105 = vrot.lane.b32.xlu1 %v1103_v25, %s1930_s15  ;;  %s1847_s15 = scalar_lea.hbm %s1846_s13, 8 }
 0x3f6   : > { %1189 = vrot.lane.b32.xlu0 %v1187_v28, %s1931_s14  ;;  %p1848_p1 = scmp.ne.s32.totalorder %s1846_s13, %s1847_s15  ;;  %p1853_p8 = scmp.lt.s32.totalorder %s1851_s29, %s1847_s15 }
 0x3f7   : > { %v1260_v31 = vmul.f32 %v1650_v20, %v1259_v29 }
 0x3f8   : > { %p1849_p3 = pnand %p1848_p1, %p2079_p13  ;;  %p1854_p7 = por %p1853_p8, %p1852_p12 }
 0x3f9   : > { %v1261_v33 = vadd.f32 %v1650_v20, %v1260_v31 }
 0x3fa   : > { %p1850_p4 = pneg %p1849_p3 }
 0x3fb   : > { %v1265_v35 = vsel %vm1264_vm8, %v1650_v20, %v1261_v33 }
 0x3fc   : > { %v1270_v37 = vsel %vm1267_vm9, %v1269_v34, %v1265_v35  ;;  %p1855_p9 = pnand %p1854_p7, %p1850_p4 }
 0x3fd   : > { %v1271_v38 = vmul.f32 %v1270_v37, %v1254_v36 }
 0x3ff   : > { %1273 = vrot.lane.b32.xlu2 %v1271_v38, %s1932_s27 }
 0x434   : > { %v770_v39 = vpop.permute.xlu0 %769 }
 0x435   : > { %773 = vst.msk [vmem:[#allocation2] sm:$0xff] %vm772_vm10, %v770_v39 }
 0x43f   : > { %v938_v44 = vpop.permute.xlu2 %937 }
 0x44d   : > { %v854_v43 = vpop.permute.xlu1 %853 }
 0x44e   : > { %857 = vst.msk [vmem:[#allocation2] sm:$0xff] %vm856_vm11, %v854_v43 }
 0x44f   : > { %941 = vst.msk [vmem:[#allocation2] sm:$0xff] %vm940_vm12, %v938_v44 }
 0x459   : > { %v1274_v49 = vpop.permute.xlu2 %1273 }
 0x45f   : > { %v1022_v46 = vpop.permute.xlu0 %1021 }
 0x460   : > { %1025 = vst.msk [vmem:[#allocation2] sm:$0xff] %vm1024_vm5, %v1022_v46 }
 0x467   : > { %v1106_v47 = vpop.permute.xlu1 %1105 }
 0x468   : > { %1109 = vst.msk [vmem:[#allocation2] sm:$0xff] %vm1108_vm13, %v1106_v47  ;;  %v1190_v48 = vpop.permute.xlu0 %1189 }
 0x469   : > { %1193 = vst.msk [vmem:[#allocation2] sm:$0xff] %vm1192_vm14, %v1190_v48 }
 0x46a   : > { %1277 = vst.msk [vmem:[#allocation2] sm:$0xff] %vm1276_vm15, %v1274_v49 }
 0x471   : > { %v1278_v50 = vld [vmem:[#allocation2] sm:$0xff] }
 0x472   : > { %1490 = vmatmul.msk.f32.vlgmr.msra.gmra.mxu2 %vm486_vm0, %v1278_v50 }
 0x4f5   : > { %v1307_v52 = vpop.f32.mrf.mxu2 }
 0x4f6   : > { %v1308_v53 = vadd.f32 %v1614_v51, %v1307_v52 }
 0x4f8   : > { %1310 = vst.msk [vmem:[%s484_s25] sm:$0xff] %vm486_vm0, %v1308_v53 }
 0x4f9   : > { %1858 = shalt.err (!%p1855_p9)
}
 0x4fa   : > { %1517 = dma.vmem_to_hbm [thread:$0]  (%p2079_p13), %s1325_s12, 128, %s1327_s21, %s1312_s24  }
 0x4fb PF: > { %s1338_s26 = sand.u32 1, %s1897_s17   ;;  %p2290_p10 = scmp.ge.s32.totalorder %s1909_s20, 2 }
 0x4fc   : > { %s1339_s30 = scalar_lea.sflag [#allocation5], %s1338_s26 }
 0x4fd   : > { %p1540_p11 = pnand %p2290_p10, %p2084_p5 }
 0x4ff   : > { %p1541_p0 = pneg %p1540_p11 }
 0x501   : > { %1892 = dma.done.wait (%p1541_p0), %s1339_s30, 128  }
 0x502   : > { %1894 = vsyncadd (%p1541_p0), %s1339_s30, 4294967168  ;;  %p27_p2 = scmp.ge.s32.totalorder %s2059_s28, 4   ;;  %s2291_s17 = smov %s1901_s18 }
 0x503   : > { %s2292_s18 = smov %s1905_s19  ;;  %s2293_s19 = smov %s2071_s1 }
 0x504   : > { %s2294_s20 = smov %s2059_s28  ;;  %29 = sbr.rel (!%p27_p2) target bundleno = 14 (0xe), region = 129 }
 0x509   :  { %1345 = vsyncpa [#allocation4], 1 }
 0x50a   :  { %1347 = vsyncpa [#allocation4 + $0x1], 1 }
 0x50b   :  { %1348 = vsyncpa [#allocation7], 1 }
 0x50c   :  { %1349 = vsyncpa [#allocation10], 1 }
 0x50d   :  { %1350 = vsyncpa [#allocation13], 1 }
 0x50e   :  { %1351 = vsyncpa [#allocation5], 1 }
 0x50f   :  { %1353 = vsyncpa [#allocation5 + $0x1], 1 }

</bundles_post_ra>
